<compile_context>
chip_gen: v7x
topology: tpu7x:2x2x1
jax: 0.10.0
libtpu: 0.0.40
codegen_flags: <defaults>
</compile_context>

<pallas_src>
import functools
import math

import jax
import jax.numpy as jnp
from jax import lax
from jax.experimental import pallas as pl
from jax.experimental.pallas import tpu as pltpu

LN_EPS = 1e-5          # PyTorch nn.LayerNorm default
VMEM_LIMIT = 32 * 1024 * 1024


# ---------------------------------------------------------------------------
# Kernel 1: fused multi-head self-attention + fc_out + residual + LayerNorm
# ---------------------------------------------------------------------------
def _mha_add_ln_kernel(xq_ref, xk_ref, xv_ref,
                       wq_ref, wk_ref, wv_ref, wfc_ref, bfc_ref,
                       gamma_ref, beta_ref, o_ref, *, heads):
    """One grid step = one batch element, all heads fused.

    xq/xk/xv : (1, L, E)   lane-dense activations (E on lane axis)
    wq/wk/wv : (E, E)      block-diagonal per-head projections (scale folded into wq)
    wfc      : (E, E)      fc_out.weight.T
    bfc,gamma,beta : (1,E)
    o_ref    : (1, Lq, E)  LayerNorm(attn_out + xq)
    """
    xq = xq_ref[0]                                   # (Lq, E)
    xk = xk_ref[0]                                   # (Lk, E)
    xv = xv_ref[0]                                   # (Lv, E)

    # All-head projections as single lane-dense matmuls (block-diagonal weights).
    q = jnp.dot(xq, wq_ref[...], preferred_element_type=jnp.float32)  # scale pre-folded
    k = jnp.dot(xk, wk_ref[...], preferred_element_type=jnp.float32)
    v = jnp.dot(xv, wv_ref[...], preferred_element_type=jnp.float32)

    e = q.shape[1]
    d = e // heads

    ctx_cols = []
    for h in range(heads):                           # static unroll, single grid step
        sl = slice(h * d, (h + 1) * d)
        qh, kh, vh = q[:, sl], k[:, sl], v[:, sl]
        # contract last axes directly — no explicit k.T transpose
        energy = lax.dot_general(qh, kh, (((1,), (1,)), ((), ())),
                                 preferred_element_type=jnp.float32)  # (Lq, Lk)
        m = jnp.max(energy, axis=-1, keepdims=True)
        p = jnp.exp(energy - m)
        s = jnp.sum(p, axis=-1, keepdims=True)
        # exact reciprocal: approx recip error compounds over 12 attention layers
        attn = p * pl.reciprocal(s, approx=False)
        ctx_cols.append(jnp.dot(attn, vh, preferred_element_type=jnp.float32))

    ctx = jnp.concatenate(ctx_cols, axis=-1)         # (Lq, E)

    # single deferred fc_out (K = E contraction) + bias + residual
    out = jnp.dot(ctx, wfc_ref[...], preferred_element_type=jnp.float32)
    y = out + bfc_ref[...] + xq

    # fused LayerNorm epilogue
    mu = jnp.mean(y, axis=-1, keepdims=True)
    yc = y - mu
    var = jnp.mean(yc * yc, axis=-1, keepdims=True)
    inv = lax.rsqrt(var + LN_EPS)
    o_ref[0] = (yc * inv * gamma_ref[...] + beta_ref[...]).astype(o_ref.dtype)


def mha_add_ln(values, keys, query, wp, heads):
    """values/keys/query: (N, L, E).  Returns LayerNorm(SelfAttention(v,k,q) + q)."""
    N, Lq, E = query.shape
    Lk = keys.shape[1]
    Lv = values.shape[1]
    kernel = functools.partial(_mha_add_ln_kernel, heads=heads)
    return pl.pallas_call(
        kernel,
        out_shape=jax.ShapeDtypeStruct((N, Lq, E), jnp.float32),
        grid_spec=pltpu.PrefetchScalarGridSpec(
            num_scalar_prefetch=0,
            grid=(N,),
            in_specs=[
                pl.BlockSpec((1, Lq, E), lambda n: (n, 0, 0)),
                pl.BlockSpec((1, Lk, E), lambda n: (n, 0, 0)),
                pl.BlockSpec((1, Lv, E), lambda n: (n, 0, 0)),
                pl.BlockSpec((E, E), lambda n: (0, 0)),   # weights: constant index map
                pl.BlockSpec((E, E), lambda n: (0, 0)),   #  -> resident across the grid
                pl.BlockSpec((E, E), lambda n: (0, 0)),
                pl.BlockSpec((E, E), lambda n: (0, 0)),
                pl.BlockSpec((1, E), lambda n: (0, 0)),
                pl.BlockSpec((1, E), lambda n: (0, 0)),
                pl.BlockSpec((1, E), lambda n: (0, 0)),
            ],
            out_specs=pl.BlockSpec((1, Lq, E), lambda n: (n, 0, 0)),
        ),
        compiler_params=pltpu.CompilerParams(
            dimension_semantics=("parallel",),
            vmem_limit_bytes=VMEM_LIMIT),
    )(query, keys, values,
      wp["wq_bd"], wp["wk_bd"], wp["wv_bd"], wp["wfcT"], wp["bfc"],
      wp["gamma"], wp["beta"])


# ---------------------------------------------------------------------------
# Kernel 2: fused feed-forward + residual + LayerNorm  (rows = N*L, lane axis = E)
# ---------------------------------------------------------------------------
def _ffn_add_ln_kernel(x_ref, w1_ref, b1_ref, w2_ref, b2_ref,
                       gamma_ref, beta_ref, o_ref):
    x = x_ref[...]                                                     # (M, E)
    h = jnp.dot(x, w1_ref[...], preferred_element_type=jnp.float32) + b1_ref[...]
    h = jnp.maximum(h, 0.0)
    f = jnp.dot(h, w2_ref[...], preferred_element_type=jnp.float32) + b2_ref[...]
    y = f + x
    mu = jnp.mean(y, axis=-1, keepdims=True)
    yc = y - mu
    var = jnp.mean(yc * yc, axis=-1, keepdims=True)
    inv = lax.rsqrt(var + LN_EPS)
    o_ref[...] = (yc * inv * gamma_ref[...] + beta_ref[...]).astype(o_ref.dtype)


def ffn_add_ln(x2d, wp):
    M, E = x2d.shape
    F = wp["w1T"].shape[1]
    return pl.pallas_call(
        _ffn_add_ln_kernel,
        out_shape=jax.ShapeDtypeStruct((M, E), jnp.float32),
        grid_spec=pltpu.PrefetchScalarGridSpec(
            num_scalar_prefetch=0,
            grid=(1,),
            in_specs=[
                pl.BlockSpec((M, E), lambda i: (0, 0)),
                pl.BlockSpec((E, F), lambda i: (0, 0)),
                pl.BlockSpec((1, F), lambda i: (0, 0)),
                pl.BlockSpec((F, E), lambda i: (0, 0)),
                pl.BlockSpec((1, E), lambda i: (0, 0)),
                pl.BlockSpec((1, E), lambda i: (0, 0)),
                pl.BlockSpec((1, E), lambda i: (0, 0)),
            ],
            out_specs=pl.BlockSpec((M, E), lambda i: (0, 0)),
        ),
        compiler_params=pltpu.CompilerParams(
            dimension_semantics=("arbitrary",),
            vmem_limit_bytes=VMEM_LIMIT),
    )(x2d, wp["w1T"], wp["b1"], wp["w2T"], wp["b2"], wp["gamma"], wp["beta"])


# ---------------------------------------------------------------------------
# Kernel 3: plain linear (final fc_out)
# ---------------------------------------------------------------------------
def _linear_kernel(x_ref, w_ref, b_ref, o_ref):
    o_ref[...] = (jnp.dot(x_ref[...], w_ref[...],
                          preferred_element_type=jnp.float32)
                  + b_ref[...]).astype(o_ref.dtype)


def linear(x2d, wT, b):
    M, K = x2d.shape
    Nout = wT.shape[1]
    return pl.pallas_call(
        _linear_kernel,
        out_shape=jax.ShapeDtypeStruct((M, Nout), jnp.float32),
        grid_spec=pltpu.PrefetchScalarGridSpec(
            num_scalar_prefetch=0,
            grid=(1,),
            in_specs=[pl.BlockSpec((M, K), lambda i: (0, 0)),
                      pl.BlockSpec((K, Nout), lambda i: (0, 0)),
                      pl.BlockSpec((1, Nout), lambda i: (0, 0))],
            out_specs=pl.BlockSpec((M, Nout), lambda i: (0, 0)),
        ),
        compiler_params=pltpu.CompilerParams(
            dimension_semantics=("arbitrary",),
            vmem_limit_bytes=VMEM_LIMIT),
    )(x2d, wT, b)


# ---------------------------------------------------------------------------
# Parameter init (mirrors the PyTorch module) + kernel-layout preprocessing
# ---------------------------------------------------------------------------
def init_decoder_params(key, embed_size, heads, seq_length, elementlength,
                        forward_expansion=4, num_layers=6):
    D = embed_size // heads
    F = forward_expansion * embed_size
    sd = 1.0 / math.sqrt(D)
    se = 1.0 / math.sqrt(embed_size)
    sf = 1.0 / math.sqrt(F)

    def u(kk, shape, s):
        return jax.random.uniform(kk, shape, jnp.float32, -s, s)

    all_keys = jax.random.split(key, num_layers + 2)
    layers = []
    for i in range(num_layers):
        k = jax.random.split(all_keys[i], 20)
        layers.append({
            "attn1": {"wq": u(k[0], (D, D), sd), "wk": u(k[1], (D, D), sd),
                      "wv": u(k[2], (D, D), sd),
                      "wfc": u(k[3], (embed_size, embed_size), se),
                      "b_fc": u(k[4], (embed_size,), se)},
            "ln_a_g": 1.0 + 0.1 * jax.random.normal(k[5], (embed_size,), jnp.float32),
            "ln_a_b": 0.1 * jax.random.normal(k[6], (embed_size,), jnp.float32),
            "attn2": {"wq": u(k[7], (D, D), sd), "wk": u(k[8], (D, D), sd),
                      "wv": u(k[9], (D, D), sd),
                      "wfc": u(k[10], (embed_size, embed_size), se),
                      "b_fc": u(k[11], (embed_size,), se)},
            "ln1_g": 1.0 + 0.1 * jax.random.normal(k[12], (embed_size,), jnp.float32),
            "ln1_b": 0.1 * jax.random.normal(k[13], (embed_size,), jnp.float32),
            "w1": u(k[14], (F, embed_size), se), "b1": u(k[15], (F,), se),
            "w2": u(k[16], (embed_size, F), sf), "b2": u(k[17], (embed_size,), sf),
            "ln2_g": 1.0 + 0.1 * jax.random.normal(k[18], (embed_size,), jnp.float32),
            "ln2_b": 0.1 * jax.random.normal(k[19], (embed_size,), jnp.float32),
        })
    ko = jax.random.split(all_keys[num_layers + 1], 2)
    return {
        "pos": jax.random.normal(all_keys[num_layers], (seq_length, embed_size),
                                 jnp.float32),
        "w_out": u(ko[0], (elementlength, embed_size), se),
        "b_out": u(ko[1], (elementlength,), se),
        "layers": layers,
    }


def _prep_attn(p, embed_size, heads):
    """nn.Linear weights -> kernel layout: block-diagonal per-head projection,
    softmax scale folded into Wq, fc weight pre-transposed."""
    scale = 1.0 / math.sqrt(float(embed_size))
    eye = jnp.eye(heads, dtype=jnp.float32)
    return {
        "wq_bd": jnp.kron(eye, p["wq"].T) * scale,
        "wk_bd": jnp.kron(eye, p["wk"].T),
        "wv_bd": jnp.kron(eye, p["wv"].T),
        "wfcT": p["wfc"].T,
        "bfc": p["b_fc"].reshape(1, embed_size),
    }


def prep_decoder_params(params, embed_size, heads):
    F = params["layers"][0]["w1"].shape[0]
    prepped = []
    for lp in params["layers"]:
        a1 = _prep_attn(lp["attn1"], embed_size, heads)
        a1["gamma"] = lp["ln_a_g"].reshape(1, embed_size)
        a1["beta"] = lp["ln_a_b"].reshape(1, embed_size)
        a2 = _prep_attn(lp["attn2"], embed_size, heads)
        a2["gamma"] = lp["ln1_g"].reshape(1, embed_size)
        a2["beta"] = lp["ln1_b"].reshape(1, embed_size)
        ffn = {"w1T": lp["w1"].T, "b1": lp["b1"].reshape(1, F),
               "w2T": lp["w2"].T, "b2": lp["b2"].reshape(1, embed_size),
               "gamma": lp["ln2_g"].reshape(1, embed_size),
               "beta": lp["ln2_b"].reshape(1, embed_size)}
        prepped.append({"attn1": a1, "attn2": a2, "ffn": ffn})
    # stack per-layer weights so the 6-layer loop is a single traced lax.scan step
    stacked = jax.tree_util.tree_map(lambda *xs: jnp.stack(xs, axis=0), *prepped)
    return {"layers": stacked, "pos": params["pos"],
            "w_outT": params["w_out"].T,
            "b_out": params["b_out"].reshape(1, -1)}


# ---------------------------------------------------------------------------
# Decoder forward (Pallas)
# ---------------------------------------------------------------------------
def decoder_pallas(enc_out, kparams, *, heads):
    N, L, E = enc_out.shape
    # TODO(synk): positional-embedding add kept in plain JAX (trivial broadcast add).
    x = enc_out + kparams["pos"][None, :, :]

    def layer_fn(x_carry, lw):
        # DecoderBlock: self-attention on x, then norm(attn + x)
        query = mha_add_ln(x_carry, x_carry, x_carry, lw["attn1"], heads)
        # TransformerBlock attention: values=enc, keys=enc, query=query, then norm1
        h = mha_add_ln(enc_out, enc_out, query, lw["attn2"], heads)
        # feed-forward + norm2, rows flattened to (N*L, E)
        x_new = ffn_add_ln(h.reshape(N * L, E), lw["ffn"]).reshape(N, L, E)
        return x_new, None

    x, _ = lax.scan(layer_fn, x, kparams["layers"])
    out = linear(x.reshape(N * L, E), kparams["w_outT"], kparams["b_out"])
    return out.reshape(N, L, -1)


# ---------------------------------------------------------------------------
# Pure-JAX reference mirroring the PyTorch forward exactly
# ---------------------------------------------------------------------------
def self_attention_ref(values, keys, query, p, embed_size, heads):
    N, Lq, E = query.shape
    Lk = keys.shape[1]
    Lv = values.shape[1]
    D = E // heads
    v = values.reshape(N, Lv, heads, D)
    k = keys.reshape(N, Lk, heads, D)
    q = query.reshape(N, Lq, heads, D)
    v = jnp.einsum('nlhd,ed->nlhe', v, p["wv"])
    k = jnp.einsum('nlhd,ed->nlhe', k, p["wk"])
    q = jnp.einsum('nlhd,ed->nlhe', q, p["wq"])
    energy = jnp.einsum('nqhd,nkhd->nhqk', q, k)
    attn = jax.nn.softmax(energy / (embed_size ** 0.5), axis=3)
    out = jnp.einsum('nhql,nlhd->nqhd', attn, v).reshape(N, Lq, heads * D)
    return out @ p["wfc"].T + p["b_fc"]


def layer_norm_ref(x, g, b, eps=LN_EPS):
    mu = jnp.mean(x, axis=-1, keepdims=True)
    var = jnp.mean((x - mu) ** 2, axis=-1, keepdims=True)
    return (x - mu) / jnp.sqrt(var + eps) * g + b


def decoder_ref(enc_out, params, embed_size, heads):
    x = enc_out + params["pos"][None, :, :]
    for lp in params["layers"]:
        a = self_attention_ref(x, x, x, lp["attn1"], embed_size, heads)
        query = layer_norm_ref(a + x, lp["ln_a_g"], lp["ln_a_b"])
        a2 = self_attention_ref(enc_out, enc_out, query, lp["attn2"], embed_size, heads)
        h = layer_norm_ref(a2 + query, lp["ln1_g"], lp["ln1_b"])
        f = jnp.maximum(h @ lp["w1"].T + lp["b1"], 0.0) @ lp["w2"].T + lp["b2"]
        x = layer_norm_ref(f + h, lp["ln2_g"], lp["ln2_b"])
    return x @ params["w_out"].T + params["b_out"]


# ---------------------------------------------------------------------------
if __name__ == "__main__":
    embed_size = 64          # heads=8 -> head_dim=8
    heads = 8
    seq_length = 8
    elementlength = 10
    N = 2

    key = jax.random.PRNGKey(0)
    kp, kx = jax.random.split(key)
    params = init_decoder_params(kp, embed_size, heads, seq_length, elementlength)
    enc_out = jax.random.normal(kx, (N, seq_length, embed_size), jnp.float32)

    kparams = prep_decoder_params(params, embed_size, heads)
    fwd = jax.jit(functools.partial(decoder_pallas, heads=heads))
    out = jax.block_until_ready(fwd(enc_out, kparams))

    ref = decoder_ref(enc_out, params, embed_size, heads)
    assert out.shape == (N, seq_length, elementlength)
    err = float(jnp.max(jnp.abs(out - ref)))
    assert jnp.allclose(out, ref, atol=1e-3, rtol=1e-3), err

    print("KERNEL_OK")
</pallas_src>

<mosaic_0001>
module attributes {stable_mosaic.version = 11 : i64} {
  func.func @_linear_kernel(%arg0: i32, %arg1: memref<16x64xf32, #tpu.memory_space<vmem>>, %arg2: memref<64x10xf32, #tpu.memory_space<vmem>>, %arg3: memref<1x10xf32, #tpu.memory_space<vmem>>, %arg4: memref<16x10xf32, #tpu.memory_space<vmem>>) attributes {dimension_semantics = [#tpu.dimension_semantics<arbitrary>], iteration_bounds = array<i64: 1>, scalar_prefetch = 0 : i64, scratch_operands = 0 : i64, tpu.core_type = #tpu.core_type<tc>, window_params = [{pipeline_mode = #tpu.pipeline_mode<synchronous>, transform_indices = @transform_0, window_bounds = array<i64: 16, 64>}, {pipeline_mode = #tpu.pipeline_mode<synchronous>, transform_indices = @transform_1, window_bounds = array<i64: 64, 10>}, {pipeline_mode = #tpu.pipeline_mode<synchronous>, transform_indices = @transform_2, window_bounds = array<i64: 1, 10>}, {pipeline_mode = #tpu.pipeline_mode<synchronous>, transform_indices = @transform_3, window_bounds = array<i64: 16, 10>}]} {
    %c0 = arith.constant 0 : index
    %c0_0 = arith.constant 0 : index
    %0 = vector.load %arg1[%c0, %c0_0] : memref<16x64xf32, #tpu.memory_space<vmem>>, vector<16x64xf32>
    %c0_1 = arith.constant 0 : index
    %c0_2 = arith.constant 0 : index
    %1 = vector.load %arg2[%c0_1, %c0_2] : memref<64x10xf32, #tpu.memory_space<vmem>>, vector<64x10xf32>
    %cst = arith.constant dense<0.000000e+00> : vector<16x10xf32>
    %2 = tpu.matmul %0, %1, %cst {dimension_numbers = #tpu.dot_dimension_numbers<[1], [0], [0], [1], [0, 0, 1, 1], [], []>} : vector<16x64xf32>, vector<64x10xf32>, vector<16x10xf32> -> vector<16x10xf32>
    %c0_3 = arith.constant 0 : index
    %c0_4 = arith.constant 0 : index
    %3 = vector.load %arg3[%c0_3, %c0_4] : memref<1x10xf32, #tpu.memory_space<vmem>>, vector<1x10xf32>
    %4 = vector.broadcast %3 : vector<1x10xf32> to vector<16x10xf32>
    %5 = arith.addf %2, %4 : vector<16x10xf32>
    %c0_5 = arith.constant 0 : index
    %c0_6 = arith.constant 0 : index
    %6 = vector.load %arg4[%c0_5, %c0_6] : memref<16x10xf32, #tpu.memory_space<vmem>>, vector<16x10xf32>
    tpu.vector_store %arg4[%c0_5, %c0_6], %5 {strides = array<i32>} : memref<16x10xf32, #tpu.memory_space<vmem>>, vector<16x10xf32>,
    return
  }
  func.func @transform_0(%arg0: i32) -> (i32, i32) {
    %c0_i32 = arith.constant 0 : i32
    %c0_i32_0 = arith.constant 0 : i32
    %c0_i32_1 = arith.constant 0 : i32
    return %c0_i32, %c0_i32_0 : i32, i32
  }
  func.func @transform_1(%arg0: i32) -> (i32, i32) {
    %c0_i32 = arith.constant 0 : i32
    %c0_i32_0 = arith.constant 0 : i32
    %c0_i32_1 = arith.constant 0 : i32
    return %c0_i32, %c0_i32_0 : i32, i32
  }
  func.func @transform_2(%arg0: i32) -> (i32, i32) {
    %c0_i32 = arith.constant 0 : i32
    %c0_i32_0 = arith.constant 0 : i32
    %c0_i32_1 = arith.constant 0 : i32
    return %c0_i32, %c0_i32_0 : i32, i32
  }
  func.func @transform_3(%arg0: i32) -> (i32, i32) {
    %c0_i32 = arith.constant 0 : i32
    %c0_i32_0 = arith.constant 0 : i32
    %c0_i32_1 = arith.constant 0 : i32
    return %c0_i32, %c0_i32_0 : i32, i32
  }
}

module attributes {stable_mosaic.version = 11 : i64} {
  func.func @_ffn_add_ln_kernel(%arg0: i32, %arg1: memref<16x64xf32, #tpu.memory_space<vmem>>, %arg2: memref<64x256xf32, #tpu.memory_space<vmem>>, %arg3: memref<1x256xf32, #tpu.memory_space<vmem>>, %arg4: memref<256x64xf32, #tpu.memory_space<vmem>>, %arg5: memref<1x64xf32, #tpu.memory_space<vmem>>, %arg6: memref<1x64xf32, #tpu.memory_space<vmem>>, %arg7: memref<1x64xf32, #tpu.memory_space<vmem>>, %arg8: memref<16x64xf32, #tpu.memory_space<vmem>>) attributes {dimension_semantics = [#tpu.dimension_semantics<arbitrary>], iteration_bounds = array<i64: 1>, scalar_prefetch = 0 : i64, scratch_operands = 0 : i64, tpu.core_type = #tpu.core_type<tc>, window_params = [{pipeline_mode = #tpu.pipeline_mode<synchronous>, transform_indices = @transform_0, window_bounds = array<i64: 16, 64>}, {pipeline_mode = #tpu.pipeline_mode<synchronous>, transform_indices = @transform_1, window_bounds = array<i64: 64, 256>}, {pipeline_mode = #tpu.pipeline_mode<synchronous>, transform_indices = @transform_2, window_bounds = array<i64: 1, 256>}, {pipeline_mode = #tpu.pipeline_mode<synchronous>, transform_indices = @transform_3, window_bounds = array<i64: 256, 64>}, {pipeline_mode = #tpu.pipeline_mode<synchronous>, transform_indices = @transform_4, window_bounds = array<i64: 1, 64>}, {pipeline_mode = #tpu.pipeline_mode<synchronous>, transform_indices = @transform_5, window_bounds = array<i64: 1, 64>}, {pipeline_mode = #tpu.pipeline_mode<synchronous>, transform_indices = @transform_6, window_bounds = array<i64: 1, 64>}, {pipeline_mode = #tpu.pipeline_mode<synchronous>, transform_indices = @transform_7, window_bounds = array<i64: 16, 64>}]} {
    %c0 = arith.constant 0 : index
    %c0_0 = arith.constant 0 : index
    %0 = vector.load %arg1[%c0, %c0_0] : memref<16x64xf32, #tpu.memory_space<vmem>>, vector<16x64xf32>
    %c0_1 = arith.constant 0 : index
    %c0_2 = arith.constant 0 : index
    %1 = vector.load %arg2[%c0_1, %c0_2] : memref<64x256xf32, #tpu.memory_space<vmem>>, vector<64x256xf32>
    %cst = arith.constant dense<0.000000e+00> : vector<16x256xf32>
    %2 = tpu.matmul %0, %1, %cst {dimension_numbers = #tpu.dot_dimension_numbers<[1], [0], [0], [1], [0, 0, 1, 1], [], []>} : vector<16x64xf32>, vector<64x256xf32>, vector<16x256xf32> -> vector<16x256xf32>
    %c0_3 = arith.constant 0 : index
    %c0_4 = arith.constant 0 : index
    %3 = vector.load %arg3[%c0_3, %c0_4] : memref<1x256xf32, #tpu.memory_space<vmem>>, vector<1x256xf32>
    %4 = vector.broadcast %3 : vector<1x256xf32> to vector<16x256xf32>
    %5 = arith.addf %2, %4 : vector<16x256xf32>
    %cst_5 = arith.constant 0.000000e+00 : f32
    %6 = vector.broadcast %cst_5 : f32 to vector<16x256xf32>
    %7 = arith.maximumf %5, %6 : vector<16x256xf32>
    %c0_6 = arith.constant 0 : index
    %c0_7 = arith.constant 0 : index
    %8 = vector.load %arg4[%c0_6, %c0_7] : memref<256x64xf32, #tpu.memory_space<vmem>>, vector<256x64xf32>
    %cst_8 = arith.constant dense<0.000000e+00> : vector<16x64xf32>
    %9 = tpu.matmul %7, %8, %cst_8 {dimension_numbers = #tpu.dot_dimension_numbers<[1], [0], [0], [1], [0, 0, 1, 1], [], []>} : vector<16x256xf32>, vector<256x64xf32>, vector<16x64xf32> -> vector<16x64xf32>
    %c0_9 = arith.constant 0 : index
    %c0_10 = arith.constant 0 : index
    %10 = vector.load %arg5[%c0_9, %c0_10] : memref<1x64xf32, #tpu.memory_space<vmem>>, vector<1x64xf32>
    %11 = vector.broadcast %10 : vector<1x64xf32> to vector<16x64xf32>
    %12 = arith.addf %9, %11 : vector<16x64xf32>
    %13 = arith.addf %12, %0 : vector<16x64xf32>
    %cst_11 = arith.constant dense<0.000000e+00> : vector<16xf32>
    %14 = vector.multi_reduction <add>, %13, %cst_11 [1] : vector<16x64xf32> to vector<16xf32>
    %15 = vector.shape_cast %14 : vector<16xf32> to vector<16x1xf32>
    %cst_12 = arith.constant 6.400000e+01 : f32
    %16 = vector.broadcast %cst_12 : f32 to vector<16x1xf32>
    %17 = arith.divf %15, %16 : vector<16x1xf32>
    %18 = vector.broadcast %17 : vector<16x1xf32> to vector<16x64xf32>
    %19 = arith.subf %13, %18 : vector<16x64xf32>
    %20 = arith.mulf %19, %19 : vector<16x64xf32>
    %cst_13 = arith.constant dense<0.000000e+00> : vector<16xf32>
    %21 = vector.multi_reduction <add>, %20, %cst_13 [1] : vector<16x64xf32> to vector<16xf32>
    %22 = vector.shape_cast %21 : vector<16xf32> to vector<16x1xf32>
    %cst_14 = arith.constant 6.400000e+01 : f32
    %23 = vector.broadcast %cst_14 : f32 to vector<16x1xf32>
    %24 = arith.divf %22, %23 : vector<16x1xf32>
    %cst_15 = arith.constant 9.99999974E-6 : f32
    %25 = vector.broadcast %cst_15 : f32 to vector<16x1xf32>
    %26 = arith.addf %24, %25 : vector<16x1xf32>
    %27 = math.rsqrt %26 : vector<16x1xf32>
    %28 = vector.broadcast %27 : vector<16x1xf32> to vector<16x64xf32>
    %29 = arith.mulf %19, %28 : vector<16x64xf32>
    %c0_16 = arith.constant 0 : index
    %c0_17 = arith.constant 0 : index
    %30 = vector.load %arg6[%c0_16, %c0_17] : memref<1x64xf32, #tpu.memory_space<vmem>>, vector<1x64xf32>
    %31 = vector.broadcast %30 : vector<1x64xf32> to vector<16x64xf32>
    %32 = arith.mulf %29, %31 : vector<16x64xf32>
    %c0_18 = arith.constant 0 : index
    %c0_19 = arith.constant 0 : index
    %33 = vector.load %arg7[%c0_18, %c0_19] : memref<1x64xf32, #tpu.memory_space<vmem>>, vector<1x64xf32>
    %34 = vector.broadcast %33 : vector<1x64xf32> to vector<16x64xf32>
    %35 = arith.addf %32, %34 : vector<16x64xf32>
    %c0_20 = arith.constant 0 : index
    %c0_21 = arith.constant 0 : index
    %36 = vector.load %arg8[%c0_20, %c0_21] : memref<16x64xf32, #tpu.memory_space<vmem>>, vector<16x64xf32>
    tpu.vector_store %arg8[%c0_20, %c0_21], %35 {strides = array<i32>} : memref<16x64xf32, #tpu.memory_space<vmem>>, vector<16x64xf32>,
    return
  }
  func.func @transform_0(%arg0: i32) -> (i32, i32) {
    %c0_i32 = arith.constant 0 : i32
    %c0_i32_0 = arith.constant 0 : i32
    %c0_i32_1 = arith.constant 0 : i32
    return %c0_i32, %c0_i32_0 : i32, i32
  }
  func.func @transform_1(%arg0: i32) -> (i32, i32) {
    %c0_i32 = arith.constant 0 : i32
    %c0_i32_0 = arith.constant 0 : i32
    %c0_i32_1 = arith.constant 0 : i32
    return %c0_i32, %c0_i32_0 : i32, i32
  }
  func.func @transform_2(%arg0: i32) -> (i32, i32) {
    %c0_i32 = arith.constant 0 : i32
    %c0_i32_0 = arith.constant 0 : i32
    %c0_i32_1 = arith.constant 0 : i32
    return %c0_i32, %c0_i32_0 : i32, i32
  }
  func.func @transform_3(%arg0: i32) -> (i32, i32) {
    %c0_i32 = arith.constant 0 : i32
    %c0_i32_0 = arith.constant 0 : i32
    %c0_i32_1 = arith.constant 0 : i32
    return %c0_i32, %c0_i32_0 : i32, i32
  }
  func.func @transform_4(%arg0: i32) -> (i32, i32) {
    %c0_i32 = arith.constant 0 : i32
    %c0_i32_0 = arith.constant 0 : i32
    %c0_i32_1 = arith.constant 0 : i32
    return %c0_i32, %c0_i32_0 : i32, i32
  }
  func.func @transform_5(%arg0: i32) -> (i32, i32) {
    %c0_i32 = arith.constant 0 : i32
    %c0_i32_0 = arith.constant 0 : i32
    %c0_i32_1 = arith.constant 0 : i32
    return %c0_i32, %c0_i32_0 : i32, i32
  }
  func.func @transform_6(%arg0: i32) -> (i32, i32) {
    %c0_i32 = arith.constant 0 : i32
    %c0_i32_0 = arith.constant 0 : i32
    %c0_i32_1 = arith.constant 0 : i32
    return %c0_i32, %c0_i32_0 : i32, i32
  }
  func.func @transform_7(%arg0: i32) -> (i32, i32) {
    %c0_i32 = arith.constant 0 : i32
    %c0_i32_0 = arith.constant 0 : i32
    %c0_i32_1 = arith.constant 0 : i32
    return %c0_i32, %c0_i32_0 : i32, i32
  }
}

module attributes {stable_mosaic.version = 11 : i64} {
  func.func @_mha_add_ln_kernel(%arg0: i32, %arg1: memref<1x8x64xf32, #tpu.memory_space<vmem>>, %arg2: memref<1x8x64xf32, #tpu.memory_space<vmem>>, %arg3: memref<1x8x64xf32, #tpu.memory_space<vmem>>, %arg4: memref<64x64xf32, #tpu.memory_space<vmem>>, %arg5: memref<64x64xf32, #tpu.memory_space<vmem>>, %arg6: memref<64x64xf32, #tpu.memory_space<vmem>>, %arg7: memref<64x64xf32, #tpu.memory_space<vmem>>, %arg8: memref<1x64xf32, #tpu.memory_space<vmem>>, %arg9: memref<1x64xf32, #tpu.memory_space<vmem>>, %arg10: memref<1x64xf32, #tpu.memory_space<vmem>>, %arg11: memref<1x8x64xf32, #tpu.memory_space<vmem>>) attributes {dimension_semantics = [#tpu.dimension_semantics<parallel>], iteration_bounds = array<i64: 2>, scalar_prefetch = 0 : i64, scratch_operands = 0 : i64, tpu.core_type = #tpu.core_type<tc>, window_params = [{transform_indices = @transform_0, window_bounds = array<i64: 1, 8, 64>}, {transform_indices = @transform_1, window_bounds = array<i64: 1, 8, 64>}, {transform_indices = @transform_2, window_bounds = array<i64: 1, 8, 64>}, {pipeline_mode = #tpu.pipeline_mode<synchronous>, transform_indices = @transform_3, window_bounds = array<i64: 64, 64>}, {pipeline_mode = #tpu.pipeline_mode<synchronous>, transform_indices = @transform_4, window_bounds = array<i64: 64, 64>}, {pipeline_mode = #tpu.pipeline_mode<synchronous>, transform_indices = @transform_5, window_bounds = array<i64: 64, 64>}, {pipeline_mode = #tpu.pipeline_mode<synchronous>, transform_indices = @transform_6, window_bounds = array<i64: 64, 64>}, {pipeline_mode = #tpu.pipeline_mode<synchronous>, transform_indices = @transform_7, window_bounds = array<i64: 1, 64>}, {pipeline_mode = #tpu.pipeline_mode<synchronous>, transform_indices = @transform_8, window_bounds = array<i64: 1, 64>}, {pipeline_mode = #tpu.pipeline_mode<synchronous>, transform_indices = @transform_9, window_bounds = array<i64: 1, 64>}, {transform_indices = @transform_10, window_bounds = array<i64: 1, 8, 64>}]} {
    %c0 = arith.constant 0 : index
    %c0_0 = arith.constant 0 : index
    %c0_1 = arith.constant 0 : index
    %0 = vector.load %arg1[%c0, %c0_0, %c0_1] : memref<1x8x64xf32, #tpu.memory_space<vmem>>, vector<1x8x64xf32>
    %1 = vector.shape_cast %0 : vector<1x8x64xf32> to vector<8x64xf32>
    %c0_2 = arith.constant 0 : index
    %c0_3 = arith.constant 0 : index
    %c0_4 = arith.constant 0 : index
    %2 = vector.load %arg2[%c0_2, %c0_3, %c0_4] : memref<1x8x64xf32, #tpu.memory_space<vmem>>, vector<1x8x64xf32>
    %3 = vector.shape_cast %2 : vector<1x8x64xf32> to vector<8x64xf32>
    %c0_5 = arith.constant 0 : index
    %c0_6 = arith.constant 0 : index
    %c0_7 = arith.constant 0 : index
    %4 = vector.load %arg3[%c0_5, %c0_6, %c0_7] : memref<1x8x64xf32, #tpu.memory_space<vmem>>, vector<1x8x64xf32>
    %5 = vector.shape_cast %4 : vector<1x8x64xf32> to vector<8x64xf32>
    %c0_8 = arith.constant 0 : index
    %c0_9 = arith.constant 0 : index
    %6 = vector.load %arg4[%c0_8, %c0_9] : memref<64x64xf32, #tpu.memory_space<vmem>>, vector<64x64xf32>
    %cst = arith.constant dense<0.000000e+00> : vector<8x64xf32>
    %7 = tpu.matmul %1, %6, %cst {dimension_numbers = #tpu.dot_dimension_numbers<[1], [0], [0], [1], [0, 0, 1, 1], [], []>} : vector<8x64xf32>, vector<64x64xf32>, vector<8x64xf32> -> vector<8x64xf32>
    %c0_10 = arith.constant 0 : index
    %c0_11 = arith.constant 0 : index
    %8 = vector.load %arg5[%c0_10, %c0_11] : memref<64x64xf32, #tpu.memory_space<vmem>>, vector<64x64xf32>
    %cst_12 = arith.constant dense<0.000000e+00> : vector<8x64xf32>
    %9 = tpu.matmul %3, %8, %cst_12 {dimension_numbers = #tpu.dot_dimension_numbers<[1], [0], [0], [1], [0, 0, 1, 1], [], []>} : vector<8x64xf32>, vector<64x64xf32>, vector<8x64xf32> -> vector<8x64xf32>
    %c0_13 = arith.constant 0 : index
    %c0_14 = arith.constant 0 : index
    %10 = vector.load %arg6[%c0_13, %c0_14] : memref<64x64xf32, #tpu.memory_space<vmem>>, vector<64x64xf32>
    %cst_15 = arith.constant dense<0.000000e+00> : vector<8x64xf32>
    %11 = tpu.matmul %5, %10, %cst_15 {dimension_numbers = #tpu.dot_dimension_numbers<[1], [0], [0], [1], [0, 0, 1, 1], [], []>} : vector<8x64xf32>, vector<64x64xf32>, vector<8x64xf32> -> vector<8x64xf32>
    %12 = vector.extract_strided_slice %7 {offsets = [0, 0], sizes = [8, 8], strides = [1, 1]} : vector<8x64xf32> to vector<8x8xf32>
    %13 = vector.extract_strided_slice %9 {offsets = [0, 0], sizes = [8, 8], strides = [1, 1]} : vector<8x64xf32> to vector<8x8xf32>
    %14 = vector.extract_strided_slice %11 {offsets = [0, 0], sizes = [8, 8], strides = [1, 1]} : vector<8x64xf32> to vector<8x8xf32>
    %cst_16 = arith.constant dense<0.000000e+00> : vector<8x8xf32>
    %15 = tpu.matmul %12, %13, %cst_16 {dimension_numbers = #tpu.dot_dimension_numbers<[1], [1], [0], [0], [0, 0, 1, 0], [], []>} : vector<8x8xf32>, vector<8x8xf32>, vector<8x8xf32> -> vector<8x8xf32>
    %cst_17 = arith.constant dense<0xFF800000> : vector<8xf32>
    %16 = vector.multi_reduction <maximumf>, %15, %cst_17 [1] : vector<8x8xf32> to vector<8xf32>
    %17 = vector.shape_cast %16 : vector<8xf32> to vector<8x1xf32>
    %18 = vector.broadcast %17 : vector<8x1xf32> to vector<8x8xf32>
    %19 = arith.subf %15, %18 : vector<8x8xf32>
    %20 = math.exp %19 : vector<8x8xf32>
    %cst_18 = arith.constant dense<0.000000e+00> : vector<8xf32>
    %21 = vector.multi_reduction <add>, %20, %cst_18 [1] : vector<8x8xf32> to vector<8xf32>
    %22 = vector.shape_cast %21 : vector<8xf32> to vector<8x1xf32>
    %23 = tpu.reciprocal %22 : vector<8x1xf32> -> vector<8x1xf32>
    %24 = vector.broadcast %23 : vector<8x1xf32> to vector<8x8xf32>
    %25 = arith.mulf %20, %24 : vector<8x8xf32>
    %cst_19 = arith.constant dense<0.000000e+00> : vector<8x8xf32>
    %26 = tpu.matmul %25, %14, %cst_19 {dimension_numbers = #tpu.dot_dimension_numbers<[1], [0], [0], [1], [0, 0, 1, 1], [], []>} : vector<8x8xf32>, vector<8x8xf32>, vector<8x8xf32> -> vector<8x8xf32>
    %27 = vector.extract_strided_slice %7 {offsets = [0, 8], sizes = [8, 8], strides = [1, 1]} : vector<8x64xf32> to vector<8x8xf32>
    %28 = vector.extract_strided_slice %9 {offsets = [0, 8], sizes = [8, 8], strides = [1, 1]} : vector<8x64xf32> to vector<8x8xf32>
    %29 = vector.extract_strided_slice %11 {offsets = [0, 8], sizes = [8, 8], strides = [1, 1]} : vector<8x64xf32> to vector<8x8xf32>
    %cst_20 = arith.constant dense<0.000000e+00> : vector<8x8xf32>
    %30 = tpu.matmul %27, %28, %cst_20 {dimension_numbers = #tpu.dot_dimension_numbers<[1], [1], [0], [0], [0, 0, 1, 0], [], []>} : vector<8x8xf32>, vector<8x8xf32>, vector<8x8xf32> -> vector<8x8xf32>
    %cst_21 = arith.constant dense<0xFF800000> : vector<8xf32>
    %31 = vector.multi_reduction <maximumf>, %30, %cst_21 [1] : vector<8x8xf32> to vector<8xf32>
    %32 = vector.shape_cast %31 : vector<8xf32> to vector<8x1xf32>
    %33 = vector.broadcast %32 : vector<8x1xf32> to vector<8x8xf32>
    %34 = arith.subf %30, %33 : vector<8x8xf32>
    %35 = math.exp %34 : vector<8x8xf32>
    %cst_22 = arith.constant dense<0.000000e+00> : vector<8xf32>
    %36 = vector.multi_reduction <add>, %35, %cst_22 [1] : vector<8x8xf32> to vector<8xf32>
    %37 = vector.shape_cast %36 : vector<8xf32> to vector<8x1xf32>
    %38 = tpu.reciprocal %37 : vector<8x1xf32> -> vector<8x1xf32>
    %39 = vector.broadcast %38 : vector<8x1xf32> to vector<8x8xf32>
    %40 = arith.mulf %35, %39 : vector<8x8xf32>
    %cst_23 = arith.constant dense<0.000000e+00> : vector<8x8xf32>
    %41 = tpu.matmul %40, %29, %cst_23 {dimension_numbers = #tpu.dot_dimension_numbers<[1], [0], [0], [1], [0, 0, 1, 1], [], []>} : vector<8x8xf32>, vector<8x8xf32>, vector<8x8xf32> -> vector<8x8xf32>
    %42 = vector.extract_strided_slice %7 {offsets = [0, 16], sizes = [8, 8], strides = [1, 1]} : vector<8x64xf32> to vector<8x8xf32>
    %43 = vector.extract_strided_slice %9 {offsets = [0, 16], sizes = [8, 8], strides = [1, 1]} : vector<8x64xf32> to vector<8x8xf32>
    %44 = vector.extract_strided_slice %11 {offsets = [0, 16], sizes = [8, 8], strides = [1, 1]} : vector<8x64xf32> to vector<8x8xf32>
    %cst_24 = arith.constant dense<0.000000e+00> : vector<8x8xf32>
    %45 = tpu.matmul %42, %43, %cst_24 {dimension_numbers = #tpu.dot_dimension_numbers<[1], [1], [0], [0], [0, 0, 1, 0], [], []>} : vector<8x8xf32>, vector<8x8xf32>, vector<8x8xf32> -> vector<8x8xf32>
    %cst_25 = arith.constant dense<0xFF800000> : vector<8xf32>
    %46 = vector.multi_reduction <maximumf>, %45, %cst_25 [1] : vector<8x8xf32> to vector<8xf32>
    %47 = vector.shape_cast %46 : vector<8xf32> to vector<8x1xf32>
    %48 = vector.broadcast %47 : vector<8x1xf32> to vector<8x8xf32>
    %49 = arith.subf %45, %48 : vector<8x8xf32>
    %50 = math.exp %49 : vector<8x8xf32>
    %cst_26 = arith.constant dense<0.000000e+00> : vector<8xf32>
    %51 = vector.multi_reduction <add>, %50, %cst_26 [1] : vector<8x8xf32> to vector<8xf32>
    %52 = vector.shape_cast %51 : vector<8xf32> to vector<8x1xf32>
    %53 = tpu.reciprocal %52 : vector<8x1xf32> -> vector<8x1xf32>
    %54 = vector.broadcast %53 : vector<8x1xf32> to vector<8x8xf32>
    %55 = arith.mulf %50, %54 : vector<8x8xf32>
    %cst_27 = arith.constant dense<0.000000e+00> : vector<8x8xf32>
    %56 = tpu.matmul %55, %44, %cst_27 {dimension_numbers = #tpu.dot_dimension_numbers<[1], [0], [0], [1], [0, 0, 1, 1], [], []>} : vector<8x8xf32>, vector<8x8xf32>, vector<8x8xf32> -> vector<8x8xf32>
    %57 = vector.extract_strided_slice %7 {offsets = [0, 24], sizes = [8, 8], strides = [1, 1]} : vector<8x64xf32> to vector<8x8xf32>
    %58 = vector.extract_strided_slice %9 {offsets = [0, 24], sizes = [8, 8], strides = [1, 1]} : vector<8x64xf32> to vector<8x8xf32>
    %59 = vector.extract_strided_slice %11 {offsets = [0, 24], sizes = [8, 8], strides = [1, 1]} : vector<8x64xf32> to vector<8x8xf32>
    %cst_28 = arith.constant dense<0.000000e+00> : vector<8x8xf32>
    %60 = tpu.matmul %57, %58, %cst_28 {dimension_numbers = #tpu.dot_dimension_numbers<[1], [1], [0], [0], [0, 0, 1, 0], [], []>} : vector<8x8xf32>, vector<8x8xf32>, vector<8x8xf32> -> vector<8x8xf32>
    %cst_29 = arith.constant dense<0xFF800000> : vector<8xf32>
    %61 = vector.multi_reduction <maximumf>, %60, %cst_29 [1] : vector<8x8xf32> to vector<8xf32>
    %62 = vector.shape_cast %61 : vector<8xf32> to vector<8x1xf32>
    %63 = vector.broadcast %62 : vector<8x1xf32> to vector<8x8xf32>
    %64 = arith.subf %60, %63 : vector<8x8xf32>
    %65 = math.exp %64 : vector<8x8xf32>
    %cst_30 = arith.constant dense<0.000000e+00> : vector<8xf32>
    %66 = vector.multi_reduction <add>, %65, %cst_30 [1] : vector<8x8xf32> to vector<8xf32>
    %67 = vector.shape_cast %66 : vector<8xf32> to vector<8x1xf32>
    %68 = tpu.reciprocal %67 : vector<8x1xf32> -> vector<8x1xf32>
    %69 = vector.broadcast %68 : vector<8x1xf32> to vector<8x8xf32>
    %70 = arith.mulf %65, %69 : vector<8x8xf32>
    %cst_31 = arith.constant dense<0.000000e+00> : vector<8x8xf32>
    %71 = tpu.matmul %70, %59, %cst_31 {dimension_numbers = #tpu.dot_dimension_numbers<[1], [0], [0], [1], [0, 0, 1, 1], [], []>} : vector<8x8xf32>, vector<8x8xf32>, vector<8x8xf32> -> vector<8x8xf32>
    %72 = vector.extract_strided_slice %7 {offsets = [0, 32], sizes = [8, 8], strides = [1, 1]} : vector<8x64xf32> to vector<8x8xf32>
    %73 = vector.extract_strided_slice %9 {offsets = [0, 32], sizes = [8, 8], strides = [1, 1]} : vector<8x64xf32> to vector<8x8xf32>
    %74 = vector.extract_strided_slice %11 {offsets = [0, 32], sizes = [8, 8], strides = [1, 1]} : vector<8x64xf32> to vector<8x8xf32>
    %cst_32 = arith.constant dense<0.000000e+00> : vector<8x8xf32>
    %75 = tpu.matmul %72, %73, %cst_32 {dimension_numbers = #tpu.dot_dimension_numbers<[1], [1], [0], [0], [0, 0, 1, 0], [], []>} : vector<8x8xf32>, vector<8x8xf32>, vector<8x8xf32> -> vector<8x8xf32>
    %cst_33 = arith.constant dense<0xFF800000> : vector<8xf32>
    %76 = vector.multi_reduction <maximumf>, %75, %cst_33 [1] : vector<8x8xf32> to vector<8xf32>
    %77 = vector.shape_cast %76 : vector<8xf32> to vector<8x1xf32>
    %78 = vector.broadcast %77 : vector<8x1xf32> to vector<8x8xf32>
    %79 = arith.subf %75, %78 : vector<8x8xf32>
    %80 = math.exp %79 : vector<8x8xf32>
    %cst_34 = arith.constant dense<0.000000e+00> : vector<8xf32>
    %81 = vector.multi_reduction <add>, %80, %cst_34 [1] : vector<8x8xf32> to vector<8xf32>
    %82 = vector.shape_cast %81 : vector<8xf32> to vector<8x1xf32>
    %83 = tpu.reciprocal %82 : vector<8x1xf32> -> vector<8x1xf32>
    %84 = vector.broadcast %83 : vector<8x1xf32> to vector<8x8xf32>
    %85 = arith.mulf %80, %84 : vector<8x8xf32>
    %cst_35 = arith.constant dense<0.000000e+00> : vector<8x8xf32>
    %86 = tpu.matmul %85, %74, %cst_35 {dimension_numbers = #tpu.dot_dimension_numbers<[1], [0], [0], [1], [0, 0, 1, 1], [], []>} : vector<8x8xf32>, vector<8x8xf32>, vector<8x8xf32> -> vector<8x8xf32>
    %87 = vector.extract_strided_slice %7 {offsets = [0, 40], sizes = [8, 8], strides = [1, 1]} : vector<8x64xf32> to vector<8x8xf32>
    %88 = vector.extract_strided_slice %9 {offsets = [0, 40], sizes = [8, 8], strides = [1, 1]} : vector<8x64xf32> to vector<8x8xf32>
    %89 = vector.extract_strided_slice %11 {offsets = [0, 40], sizes = [8, 8], strides = [1, 1]} : vector<8x64xf32> to vector<8x8xf32>
    %cst_36 = arith.constant dense<0.000000e+00> : vector<8x8xf32>
    %90 = tpu.matmul %87, %88, %cst_36 {dimension_numbers = #tpu.dot_dimension_numbers<[1], [1], [0], [0], [0, 0, 1, 0], [], []>} : vector<8x8xf32>, vector<8x8xf32>, vector<8x8xf32> -> vector<8x8xf32>
    %cst_37 = arith.constant dense<0xFF800000> : vector<8xf32>
    %91 = vector.multi_reduction <maximumf>, %90, %cst_37 [1] : vector<8x8xf32> to vector<8xf32>
    %92 = vector.shape_cast %91 : vector<8xf32> to vector<8x1xf32>
    %93 = vector.broadcast %92 : vector<8x1xf32> to vector<8x8xf32>
    %94 = arith.subf %90, %93 : vector<8x8xf32>
    %95 = math.exp %94 : vector<8x8xf32>
    %cst_38 = arith.constant dense<0.000000e+00> : vector<8xf32>
    %96 = vector.multi_reduction <add>, %95, %cst_38 [1] : vector<8x8xf32> to vector<8xf32>
    %97 = vector.shape_cast %96 : vector<8xf32> to vector<8x1xf32>
    %98 = tpu.reciprocal %97 : vector<8x1xf32> -> vector<8x1xf32>
    %99 = vector.broadcast %98 : vector<8x1xf32> to vector<8x8xf32>
    %100 = arith.mulf %95, %99 : vector<8x8xf32>
    %cst_39 = arith.constant dense<0.000000e+00> : vector<8x8xf32>
    %101 = tpu.matmul %100, %89, %cst_39 {dimension_numbers = #tpu.dot_dimension_numbers<[1], [0], [0], [1], [0, 0, 1, 1], [], []>} : vector<8x8xf32>, vector<8x8xf32>, vector<8x8xf32> -> vector<8x8xf32>
    %102 = vector.extract_strided_slice %7 {offsets = [0, 48], sizes = [8, 8], strides = [1, 1]} : vector<8x64xf32> to vector<8x8xf32>
    %103 = vector.extract_strided_slice %9 {offsets = [0, 48], sizes = [8, 8], strides = [1, 1]} : vector<8x64xf32> to vector<8x8xf32>
    %104 = vector.extract_strided_slice %11 {offsets = [0, 48], sizes = [8, 8], strides = [1, 1]} : vector<8x64xf32> to vector<8x8xf32>
    %cst_40 = arith.constant dense<0.000000e+00> : vector<8x8xf32>
    %105 = tpu.matmul %102, %103, %cst_40 {dimension_numbers = #tpu.dot_dimension_numbers<[1], [1], [0], [0], [0, 0, 1, 0], [], []>} : vector<8x8xf32>, vector<8x8xf32>, vector<8x8xf32> -> vector<8x8xf32>
    %cst_41 = arith.constant dense<0xFF800000> : vector<8xf32>
    %106 = vector.multi_reduction <maximumf>, %105, %cst_41 [1] : vector<8x8xf32> to vector<8xf32>
    %107 = vector.shape_cast %106 : vector<8xf32> to vector<8x1xf32>
    %108 = vector.broadcast %107 : vector<8x1xf32> to vector<8x8xf32>
    %109 = arith.subf %105, %108 : vector<8x8xf32>
    %110 = math.exp %109 : vector<8x8xf32>
    %cst_42 = arith.constant dense<0.000000e+00> : vector<8xf32>
    %111 = vector.multi_reduction <add>, %110, %cst_42 [1] : vector<8x8xf32> to vector<8xf32>
    %112 = vector.shape_cast %111 : vector<8xf32> to vector<8x1xf32>
    %113 = tpu.reciprocal %112 : vector<8x1xf32> -> vector<8x1xf32>
    %114 = vector.broadcast %113 : vector<8x1xf32> to vector<8x8xf32>
    %115 = arith.mulf %110, %114 : vector<8x8xf32>
    %cst_43 = arith.constant dense<0.000000e+00> : vector<8x8xf32>
    %116 = tpu.matmul %115, %104, %cst_43 {dimension_numbers = #tpu.dot_dimension_numbers<[1], [0], [0], [1], [0, 0, 1, 1], [], []>} : vector<8x8xf32>, vector<8x8xf32>, vector<8x8xf32> -> vector<8x8xf32>
    %117 = vector.extract_strided_slice %7 {offsets = [0, 56], sizes = [8, 8], strides = [1, 1]} : vector<8x64xf32> to vector<8x8xf32>
    %118 = vector.extract_strided_slice %9 {offsets = [0, 56], sizes = [8, 8], strides = [1, 1]} : vector<8x64xf32> to vector<8x8xf32>
    %119 = vector.extract_strided_slice %11 {offsets = [0, 56], sizes = [8, 8], strides = [1, 1]} : vector<8x64xf32> to vector<8x8xf32>
    %cst_44 = arith.constant dense<0.000000e+00> : vector<8x8xf32>
    %120 = tpu.matmul %117, %118, %cst_44 {dimension_numbers = #tpu.dot_dimension_numbers<[1], [1], [0], [0], [0, 0, 1, 0], [], []>} : vector<8x8xf32>, vector<8x8xf32>, vector<8x8xf32> -> vector<8x8xf32>
    %cst_45 = arith.constant dense<0xFF800000> : vector<8xf32>
    %121 = vector.multi_reduction <maximumf>, %120, %cst_45 [1] : vector<8x8xf32> to vector<8xf32>
    %122 = vector.shape_cast %121 : vector<8xf32> to vector<8x1xf32>
    %123 = vector.broadcast %122 : vector<8x1xf32> to vector<8x8xf32>
    %124 = arith.subf %120, %123 : vector<8x8xf32>
    %125 = math.exp %124 : vector<8x8xf32>
    %cst_46 = arith.constant dense<0.000000e+00> : vector<8xf32>
    %126 = vector.multi_reduction <add>, %125, %cst_46 [1] : vector<8x8xf32> to vector<8xf32>
    %127 = vector.shape_cast %126 : vector<8xf32> to vector<8x1xf32>
    %128 = tpu.reciprocal %127 : vector<8x1xf32> -> vector<8x1xf32>
    %129 = vector.broadcast %128 : vector<8x1xf32> to vector<8x8xf32>
    %130 = arith.mulf %125, %129 : vector<8x8xf32>
    %cst_47 = arith.constant dense<0.000000e+00> : vector<8x8xf32>
    %131 = tpu.matmul %130, %119, %cst_47 {dimension_numbers = #tpu.dot_dimension_numbers<[1], [0], [0], [1], [0, 0, 1, 1], [], []>} : vector<8x8xf32>, vector<8x8xf32>, vector<8x8xf32> -> vector<8x8xf32>
    %132 = tpu.concatenate %26, %41, %56, %71, %86, %101, %116, %131 in 1 : vector<8x8xf32>, vector<8x8xf32>, vector<8x8xf32>, vector<8x8xf32>, vector<8x8xf32>, vector<8x8xf32>, vector<8x8xf32>, vector<8x8xf32> -> vector<8x64xf32>
    %c0_48 = arith.constant 0 : index
    %c0_49 = arith.constant 0 : index
    %133 = vector.load %arg7[%c0_48, %c0_49] : memref<64x64xf32, #tpu.memory_space<vmem>>, vector<64x64xf32>
    %cst_50 = arith.constant dense<0.000000e+00> : vector<8x64xf32>
    %134 = tpu.matmul %132, %133, %cst_50 {dimension_numbers = #tpu.dot_dimension_numbers<[1], [0], [0], [1], [0, 0, 1, 1], [], []>} : vector<8x64xf32>, vector<64x64xf32>, vector<8x64xf32> -> vector<8x64xf32>
    %c0_51 = arith.constant 0 : index
    %c0_52 = arith.constant 0 : index
    %135 = vector.load %arg8[%c0_51, %c0_52] : memref<1x64xf32, #tpu.memory_space<vmem>>, vector<1x64xf32>
    %136 = vector.broadcast %135 : vector<1x64xf32> to vector<8x64xf32>
    %137 = arith.addf %134, %136 : vector<8x64xf32>
    %138 = arith.addf %137, %1 : vector<8x64xf32>
    %cst_53 = arith.constant dense<0.000000e+00> : vector<8xf32>
    %139 = vector.multi_reduction <add>, %138, %cst_53 [1] : vector<8x64xf32> to vector<8xf32>
    %140 = vector.shape_cast %139 : vector<8xf32> to vector<8x1xf32>
    %cst_54 = arith.constant 6.400000e+01 : f32
    %141 = vector.broadcast %cst_54 : f32 to vector<8x1xf32>
    %142 = arith.divf %140, %141 : vector<8x1xf32>
    %143 = vector.broadcast %142 : vector<8x1xf32> to vector<8x64xf32>
    %144 = arith.subf %138, %143 : vector<8x64xf32>
    %145 = arith.mulf %144, %144 : vector<8x64xf32>
    %cst_55 = arith.constant dense<0.000000e+00> : vector<8xf32>
    %146 = vector.multi_reduction <add>, %145, %cst_55 [1] : vector<8x64xf32> to vector<8xf32>
    %147 = vector.shape_cast %146 : vector<8xf32> to vector<8x1xf32>
    %cst_56 = arith.constant 6.400000e+01 : f32
    %148 = vector.broadcast %cst_56 : f32 to vector<8x1xf32>
    %149 = arith.divf %147, %148 : vector<8x1xf32>
    %cst_57 = arith.constant 9.99999974E-6 : f32
    %150 = vector.broadcast %cst_57 : f32 to vector<8x1xf32>
    %151 = arith.addf %149, %150 : vector<8x1xf32>
    %152 = math.rsqrt %151 : vector<8x1xf32>
    %153 = vector.broadcast %152 : vector<8x1xf32> to vector<8x64xf32>
    %154 = arith.mulf %144, %153 : vector<8x64xf32>
    %c0_58 = arith.constant 0 : index
    %c0_59 = arith.constant 0 : index
    %155 = vector.load %arg9[%c0_58, %c0_59] : memref<1x64xf32, #tpu.memory_space<vmem>>, vector<1x64xf32>
    %156 = vector.broadcast %155 : vector<1x64xf32> to vector<8x64xf32>
    %157 = arith.mulf %154, %156 : vector<8x64xf32>
    %c0_60 = arith.constant 0 : index
    %c0_61 = arith.constant 0 : index
    %158 = vector.load %arg10[%c0_60, %c0_61] : memref<1x64xf32, #tpu.memory_space<vmem>>, vector<1x64xf32>
    %159 = vector.broadcast %158 : vector<1x64xf32> to vector<8x64xf32>
    %160 = arith.addf %157, %159 : vector<8x64xf32>
    %c0_62 = arith.constant 0 : index
    %c0_63 = arith.constant 0 : index
    %c0_64 = arith.constant 0 : index
    %161 = vector.load %arg11[%c0_62, %c0_63, %c0_64] : memref<1x8x64xf32, #tpu.memory_space<vmem>>, vector<1x8x64xf32>
    %162 = vector.shape_cast %161 : vector<1x8x64xf32> to vector<8x64xf32>
    %163 = vector.shape_cast %160 : vector<8x64xf32> to vector<1x8x64xf32>
    tpu.vector_store %arg11[%c0_62, %c0_63, %c0_64], %163 {strides = array<i32>} : memref<1x8x64xf32, #tpu.memory_space<vmem>>, vector<1x8x64xf32>,
    return
  }
  func.func @transform_0(%arg0: i32) -> (i32, i32, i32) {
    %c0_i32 = arith.constant 0 : i32
    %c0_i32_0 = arith.constant 0 : i32
    %c0_i32_1 = arith.constant 0 : i32
    return %arg0, %c0_i32, %c0_i32_0 : i32, i32, i32
  }
  func.func @transform_1(%arg0: i32) -> (i32, i32, i32) {
    %c0_i32 = arith.constant 0 : i32
    %c0_i32_0 = arith.constant 0 : i32
    %c0_i32_1 = arith.constant 0 : i32
    return %arg0, %c0_i32, %c0_i32_0 : i32, i32, i32
  }
  func.func @transform_2(%arg0: i32) -> (i32, i32, i32) {
    %c0_i32 = arith.constant 0 : i32
    %c0_i32_0 = arith.constant 0 : i32
    %c0_i32_1 = arith.constant 0 : i32
    return %arg0, %c0_i32, %c0_i32_0 : i32, i32, i32
  }
  func.func @transform_3(%arg0: i32) -> (i32, i32) {
    %c0_i32 = arith.constant 0 : i32
    %c0_i32_0 = arith.constant 0 : i32
    %c0_i32_1 = arith.constant 0 : i32
    return %c0_i32, %c0_i32_0 : i32, i32
  }
  func.func @transform_4(%arg0: i32) -> (i32, i32) {
    %c0_i32 = arith.constant 0 : i32
    %c0_i32_0 = arith.constant 0 : i32
    %c0_i32_1 = arith.constant 0 : i32
    return %c0_i32, %c0_i32_0 : i32, i32
  }
  func.func @transform_5(%arg0: i32) -> (i32, i32) {
    %c0_i32 = arith.constant 0 : i32
    %c0_i32_0 = arith.constant 0 : i32
    %c0_i32_1 = arith.constant 0 : i32
    return %c0_i32, %c0_i32_0 : i32, i32
  }
  func.func @transform_6(%arg0: i32) -> (i32, i32) {
    %c0_i32 = arith.constant 0 : i32
    %c0_i32_0 = arith.constant 0 : i32
    %c0_i32_1 = arith.constant 0 : i32
    return %c0_i32, %c0_i32_0 : i32, i32
  }
  func.func @transform_7(%arg0: i32) -> (i32, i32) {
    %c0_i32 = arith.constant 0 : i32
    %c0_i32_0 = arith.constant 0 : i32
    %c0_i32_1 = arith.constant 0 : i32
    return %c0_i32, %c0_i32_0 : i32, i32
  }
  func.func @transform_8(%arg0: i32) -> (i32, i32) {
    %c0_i32 = arith.constant 0 : i32
    %c0_i32_0 = arith.constant 0 : i32
    %c0_i32_1 = arith.constant 0 : i32
    return %c0_i32, %c0_i32_0 : i32, i32
  }
  func.func @transform_9(%arg0: i32) -> (i32, i32) {
    %c0_i32 = arith.constant 0 : i32
    %c0_i32_0 = arith.constant 0 : i32
    %c0_i32_1 = arith.constant 0 : i32
    return %c0_i32, %c0_i32_0 : i32, i32
  }
  func.func @transform_10(%arg0: i32) -> (i32, i32, i32) {
    %c0_i32 = arith.constant 0 : i32
    %c0_i32_0 = arith.constant 0 : i32
    %c0_i32_1 = arith.constant 0 : i32
    return %arg0, %c0_i32, %c0_i32_0 : i32, i32, i32
  }
}

</mosaic_0001>

<bundles_post_ra>
// kernel: decoder_pallas.1
= control target key start
LH: loop header
LB: loop body
LE: loop exit
PB: predicated region body
PF: predicated region fallthrough
CT: control target
= control target key end

     0   :  { %vm32_vm0 = vcmask 523264   ;;  %s278_s0 = inlined_call_operand.vmem [shape: f32[16,64], index: 0, kind: input, shape index: {}]   ;;  %s279_s1 = inlined_call_operand.vmem [shape: f32[64,10], index: 1, kind: input, shape index: {}]   ;;  %s280_s2 = inlined_call_operand.vmem [shape: f32[1,10], index: 2, kind: input, shape index: {}]   ;;  %s281_s3 = inlined_call_operand.hbm [shape: f32[16,10], index: 3, kind: output, shape index: {}]  }
   0x1   :  { %v17_v0 = vld [vmem:[%s279_s1] sm:$0xff]  ;;  %v18_v1 = vld [vmem:[%s279_s1 + $0x8] sm:$0xff]  ;;  %v19_v2 = vld [vmem:[%s279_s1 + $0x10] sm:$0xff] }
   0x2   :  { %v165_v3 = vpack.c.bf16 %v18_v1, %v17_v0  ;;  %v20_v4 = vld [vmem:[%s279_s1 + $0x18] sm:$0xff]  ;;  %v21_v6 = vld [vmem:[%s279_s1 + $0x20] sm:$0xff]  ;;  %v22_v7 = vld [vmem:[%s279_s1 + $0x28] sm:$0xff] }
   0x3   :  { %v169_v5 = vpack.c.bf16 %v20_v4, %v19_v2  ;;  %v15_v8 = vld [vmem:[%s278_s0] sm:$0xff] }
   0x4   :  { %166 = vmatprep.subr.bf16.mxu0 %v165_v3  ;;  %162 = vmatprep.mubr.msk.f32.mxu0 %vm32_vm0, %v15_v8 }
   0x5   :  { %8 = vsyncpa [#allocation3], 0  ;;  %168 = vmatpush3.bf16.msra.mxu0 %v165_v3  ;;  %v173_v9 = vpack.c.bf16 %v22_v7, %v21_v6  ;;  %v23_v10 = vld [vmem:[%s279_s1 + $0x30] sm:$0xff]  ;;  %v24_v11 = vld [vmem:[%s279_s1 + $0x38] sm:$0xff]  ;;  %s208_s7 = smov [#allocation2]   ;;  %vm114_vm1 = vcmask 80896  }
   0x6   :  { %170 = vmatprep.subr.bf16.mxu0 %v169_v5  ;;  %v177_v12 = vpack.c.bf16 %v24_v11, %v23_v10  ;;  %v16_v13 = vld [vmem:[%s278_s0 + $0x8] sm:$0xff]  ;;  %v133_v14 = vld [vmem:[%s280_s2] ss:$0 sm:$0xff]  ;;  %s122_s8 = sshll.u32 %s208_s7, 4  ;;  %s123_s8 = int_to_ptr.vmem [resolvable:$true] %s122_s8 }
   0x7   :  { %s184_s1 = scalar_lea.vmem %s123_s8, 256  ;;  %p189_p1 = scmp.lt.s32.totalorder %s123_s8, %s123_s8 }
   0x8   :  { %p185_p0 = scmp.ne.s32.totalorder %s123_s8, %s184_s1  ;;  %p190_p2 = scmp.lt.s32.totalorder %s184_s1, %s184_s1 }
   0x9   :  { %172 = vmatpush3.bf16.msra.mxu0 %v169_v5 }
   0xa   :  { %174 = vmatprep.subr.bf16.mxu0 %v173_v9  ;;  %p191_p3 = por %p190_p2, %p189_p1 }
   0xc   :  { %p192_p4 = pnand %p191_p3, %p185_p0 }
   0xd   :  { %176 = vmatpush3.bf16.msra.mxu0 %v173_v9 }
   0xe   :  { %178 = vmatprep.subr.bf16.mxu0 %v177_v12 }
  0x11   :  { %180 = vmatpush3.bf16.msra.mxu0 %v177_v12 }
  0x14   :  { %163 = vmatmul.mubr.msk.f32.vlgmr.msra.gmra.mrb[0].mxu0 %vm32_vm0, %v16_v13 }
  0xe7   :  { %v164_v15 = vpop.f32.mrb[0].mxu0 }
  0xe8   :  { %v111_v16 = vadd.f32 %v164_v15, %v133_v14  ;;  %v105_v17 = vpop.f32.mrb[1].mxu0 }
  0xe9   :  { %v106_v18 = vadd.f32 %v133_v14, %v105_v17 }
  0xea   :  { %116 = vst.msk [vmem:[#allocation2 + $0x8] sm:$0xff] %vm114_vm1, %v111_v16 }
  0xeb   :  { %115 = vst.msk [vmem:[#allocation2] sm:$0xff] %vm114_vm1, %v106_v18 }
  0xec   :  { %195 = shalt.err (!%p192_p4)
}
  0xed   :  { %s196_s2 = scalar_lea.hbm %s281_s3, 256 }
  0xee   :  { %p197_p5 = scmp.ne.s32.totalorder %s281_s3, %s196_s2  ;;  %p200_p6 = scmp.lt.u32.totalorder %s196_s2, %s281_s3 }
  0xf0   :  { %p202_p7 = pnand %p200_p6, %p197_p5 }
  0xf2   :  { %205 = shalt.err (!%p202_p7)
}
  0xf3   :  { %s209_s14 = smov 128   ;;  %s210_s15 = smov 8  }
  0xf4   :  { %128 = dma.vmem_to_hbm [thread:$0]  %s123_s8, 256, %s281_s3, [#allocation3], %s209_s14, %s209_s14, %s210_s15  }
  0xf5   :  { %206 = dma.done.wait [#allocation3], 256  }
  0xf6   :  { %207 = vsyncadd [#allocation3], 4294967040 }
  0xf7   :  { %132 = vsyncpa [#allocation3], 1 }

// kernel: closed_call.12
= control target key start
LH: loop header
LB: loop body
LE: loop exit
PB: predicated region body
PF: predicated region fallthrough
CT: control target
= control target key end

     0   :  { %v407_v3 = vmov 0.0   ;;  %vm56_vm0 = vcmask 523264   ;;  %s634_s1 = inlined_call_operand.vmem [shape: f32[64,256], index: 1, kind: input, shape index: {}]   ;;  %s635_s3 = inlined_call_operand.vmem [shape: f32[256,64], index: 3, kind: input, shape index: {}]   ;;  %s636_s0 = inlined_call_operand.vmem [shape: f32[16,64], index: 0, kind: input, shape index: {}]   ;;  %s637_s2 = inlined_call_operand.vmem [shape: f32[1,256], index: 2, kind: input, shape index: {}]   ;;  %s638_s4 = inlined_call_operand.vmem [shape: f32[1,64], index: 4, kind: input, shape index: {}]   ;;  %s639_s5 = inlined_call_operand.vmem [shape: f32[1,64], index: 5, kind: input, shape index: {}]   ;;  %s640_s6 = inlined_call_operand.vmem [shape: f32[1,64], index: 6, kind: input, shape index: {}]   ;;  %s641_s7 = inlined_call_operand.vmem [shape: f32[16,64], index: 7, kind: output, shape index: {}]  }
   0x1   :  { %v29_v0 = vld [vmem:[%s634_s1 + $0x8] sm:$0xff]  ;;  %v31_v1 = vld [vmem:[%s634_s1 + $0x18] sm:$0xff]  ;;  %v28_v2 = vld [vmem:[%s634_s1] sm:$0xff]  ;;  %127 = vmatprep.mubr.f32.mxu0 %v407_v3 }
   0x2   :  { %v354_v4 = vpack.c.bf16 %v31_v1, %v29_v0  ;;  %v30_v5 = vld [vmem:[%s634_s1 + $0x10] sm:$0xff]  ;;  %v33_v6 = vld [vmem:[%s634_s1 + $0x28] sm:$0xff]  ;;  %v35_v7 = vld [vmem:[%s634_s1 + $0x38] sm:$0xff] }
   0x3   :  { %v356_v8 = vpack.c.bf16 %v30_v5, %v28_v2  ;;  %v358_v9 = vpack.c.bf16 %v35_v7, %v33_v6  ;;  %v32_v10 = vld [vmem:[%s634_s1 + $0x20] sm:$0xff]  ;;  %v34_v11 = vld [vmem:[%s634_s1 + $0x30] sm:$0xff]  ;;  %v37_v12 = vld [vmem:[%s634_s1 + $0x48] sm:$0xff] }
   0x4   :  { %355 = vmatprep.subr.bf16.mxu0 %v354_v4  ;;  %v39_v13 = vld [vmem:[%s634_s1 + $0x58] sm:$0xff]  ;;  %v360_v14 = vpack.c.bf16 %v34_v11, %v32_v10  ;;  %v36_v15 = vld [vmem:[%s634_s1 + $0x40] sm:$0xff]  ;;  %v38_v17 = vld [vmem:[%s634_s1 + $0x50] sm:$0xff]  ;;  %v46_v11 = vlaneseq }
   0x5   :  { %357 = vmatpush1.bf16.msra.mxu0 %v356_v8  ;;  %v362_v16 = vpack.c.bf16 %v39_v13, %v37_v12  ;;  %v41_v18 = vld [vmem:[%s634_s1 + $0x68] sm:$0xff]  ;;  %v43_v19 = vld [vmem:[%s634_s1 + $0x78] sm:$0xff]  ;;  %v160_v20 = vld [vmem:[%s635_s3 + $0x80] sm:$0xff]  ;;  %v364_v27 = vpack.c.bf16 %v38_v17, %v36_v15 }
   0x6   :  { %359 = vmatprep.subr.bf16.mxu0 %v358_v9  ;;  %v161_v21 = vld [vmem:[%s635_s3 + $0x88] sm:$0xff]  ;;  %v144_v22 = vld [vmem:[%s635_s3] sm:$0xff]  ;;  %v162_v25 = vld [vmem:[%s635_s3 + $0x90] sm:$0xff]  ;;  %v366_v33 = vpack.c.bf16 %v43_v19, %v41_v18  ;;  %v47_v12 = vshrl.u32 %v46_v11, 7 }
   0x7   :  { %v370_v23 = vpack.c.bf16 %v161_v21, %v160_v20  ;;  %v145_v24 = vld [vmem:[%s635_s3 + $0x8] sm:$0xff]  ;;  %v163_v26 = vld [vmem:[%s635_s3 + $0x98] sm:$0xff]  ;;  %v146_v30 = vld [vmem:[%s635_s3 + $0x10] sm:$0xff] }
   0x8   :  { %v372_v28 = vpack.c.bf16 %v145_v24, %v144_v22  ;;  %v374_v29 = vpack.c.bf16 %v163_v26, %v162_v25  ;;  %v147_v31 = vld [vmem:[%s635_s3 + $0x18] sm:$0xff]  ;;  %v164_v32 = vld [vmem:[%s635_s3 + $0xa0] sm:$0xff]  ;;  %v42_v35 = vld [vmem:[%s634_s1 + $0x70] sm:$0xff]  ;;  %v48_v13 = vsub.s32 0, %v47_v12  ;;  %v52_v15 = vsub.s32 1, %v47_v12 }
   0x9   :  { %361 = vmatpush1.bf16.msra.mxu0 %v360_v14  ;;  %v40_v34 = vld [vmem:[%s634_s1 + $0x60] sm:$0xff]  ;;  %371 = vmatprep.subr.bf16.mxu1 %v370_v23  ;;  %v165_v36 = vld [vmem:[%s635_s3 + $0xa8] sm:$0xff]  ;;  %v376_v37 = vpack.c.bf16 %v147_v31, %v146_v30  ;;  %v166_v42 = vld [vmem:[%s635_s3 + $0xb0] sm:$0xff] }
   0xa   :  { %363 = vmatprep.subr.bf16.mxu0 %v362_v16  ;;  %373 = vmatpush3.bf16.msra.mxu1 %v372_v28  ;;  %v378_v38 = vpack.c.bf16 %v165_v36, %v164_v32  ;;  %v148_v39 = vld [vmem:[%s635_s3 + $0x20] sm:$0xff]  ;;  %v149_v40 = vld [vmem:[%s635_s3 + $0x28] sm:$0xff]  ;;  %v368_v41 = vpack.c.bf16 %v42_v35, %v40_v34  ;;  %v167_v43 = vld [vmem:[%s635_s3 + $0xb8] sm:$0xff] }
   0xb   :  { %375 = vmatprep.subr.bf16.mxu1 %v374_v29  ;;  %v380_v44 = vpack.c.bf16 %v149_v40, %v148_v39  ;;  %v382_v45 = vpack.c.bf16 %v167_v43, %v166_v42  ;;  %v150_v46 = vld [vmem:[%s635_s3 + $0x30] sm:$0xff]  ;;  %v151_v47 = vld [vmem:[%s635_s3 + $0x38] sm:$0xff]  ;;  %v548_v48 = vld [vmem:[%s636_s0] sm:$0xff] }
   0xc   :  { %v168_v49 = vld [vmem:[%s635_s3 + $0xc0] sm:$0xff]  ;;  %v169_v50 = vld [vmem:[%s635_s3 + $0xc8] sm:$0xff]  ;;  %v384_v51 = vpack.c.bf16 %v151_v47, %v150_v46  ;;  %v170_v56 = vld [vmem:[%s635_s3 + $0xd0] sm:$0xff] }
   0xd   :  { %365 = vmatpush1.bf16.msra.mxu0 %v364_v27  ;;  %v386_v52 = vpack.c.bf16 %v169_v50, %v168_v49  ;;  %v152_v53 = vld [vmem:[%s635_s3 + $0x40] sm:$0xff]  ;;  %v153_v54 = vld [vmem:[%s635_s3 + $0x48] sm:$0xff]  ;;  %v171_v57 = vld [vmem:[%s635_s3 + $0xd8] sm:$0xff] }
   0xe   :  { %367 = vmatprep.subr.bf16.mxu0 %v366_v33  ;;  %377 = vmatpush3.bf16.msra.mxu1 %v376_v37  ;;  %v568_v55 = vld [vmem:[%s636_s0 + $0x8] sm:$0xff]  ;;  %v388_v58 = vpack.c.bf16 %v153_v54, %v152_v53  ;;  %v390_v59 = vpack.c.bf16 %v171_v57, %v170_v56  ;;  %v154_v60 = vld [vmem:[%s635_s3 + $0x50] sm:$0xff]  ;;  %v155_v61 = vld [vmem:[%s635_s3 + $0x58] sm:$0xff] }
   0xf   :  { %379 = vmatprep.subr.bf16.mxu1 %v378_v38  ;;  %v172_v62 = vld [vmem:[%s635_s3 + $0xe0] sm:$0xff]  ;;  %v173_v63 = vld [vmem:[%s635_s3 + $0xe8] sm:$0xff]  ;;  %v392_v0 = vpack.c.bf16 %v155_v61, %v154_v60  ;;  %v174_v5 = vld [vmem:[%s635_s3 + $0xf0] sm:$0xff] }
  0x10   :  { %v394_v1 = vpack.c.bf16 %v173_v63, %v172_v62  ;;  %v156_v2 = vld [vmem:[%s635_s3 + $0x60] sm:$0xff]  ;;  %v175_v6 = vld [vmem:[%s635_s3 + $0xf8] sm:$0xff]  ;;  %v158_v8 = vld [vmem:[%s635_s3 + $0x70] sm:$0xff] }
  0x11   :  { %369 = vmatpush1.bf16.msra.mxu0 %v368_v41  ;;  %v398_v7 = vpack.c.bf16 %v175_v6, %v174_v5  ;;  %v159_v9 = vld [vmem:[%s635_s3 + $0x78] sm:$0xff]  ;;  %v44_v14 = vld [vmem:[%s637_s2] sm:$0x3] }
  0x12   :  { %381 = vmatpush3.bf16.msra.mxu1 %v380_v44  ;;  %v400_v10 = vpack.c.bf16 %v159_v9, %v158_v8  ;;  %v49_v16 = vrot.slane %v44_v14, %v48_v13  ;;  %v53_v17 = vrot.slane %v44_v14, %v52_v15  ;;  %v313_v31 = vld [vmem:[%s638_s4] ss:$0 sm:$0xff] }
  0x13   :  { %383 = vmatprep.subr.bf16.mxu1 %v382_v45  ;;  %v314_v60 = vld [vmem:[%s639_s5] ss:$0 sm:$0xff] }
  0x14   :  { %311 = vmatmul.mubr.msk.f32.vlgmr.msra.gmra.mrb[0].mxu0 %vm56_vm0, %v548_v48  ;;  %v315_v62 = vld [vmem:[%s640_s6] ss:$0 sm:$0xff] }
  0x15   :  { %133 = vmatprep.mubr.f32.mxu0 %v407_v3  ;;  %v157_v3 = vld [vmem:[%s635_s3 + $0x68] sm:$0xff] }
  0x16   :  { %385 = vmatpush3.bf16.msra.mxu1 %v384_v51  ;;  %v396_v4 = vpack.c.bf16 %v157_v3, %v156_v2 }
  0x17   :  { %387 = vmatprep.subr.bf16.mxu1 %v386_v52 }
  0x18   :  { %312 = vmatmul.mubr.msk.f32.gmra.mrb[2].mxu0 %vm56_vm0, %v568_v55 }
  0x1a   :  { %389 = vmatpush3.bf16.msra.mxu1 %v388_v58 }
  0x1b   :  { %391 = vmatprep.subr.bf16.mxu1 %v390_v59 }
  0x1e   :  { %393 = vmatpush3.bf16.msra.mxu1 %v392_v0 }
  0x1f   :  { %395 = vmatprep.subr.bf16.mxu1 %v394_v1 }
  0x22   :  { %397 = vmatpush3.bf16.msra.mxu1 %v396_v4 }
  0x23   :  { %399 = vmatprep.subr.bf16.mxu1 %v398_v7 }
  0x26   :  { %401 = vmatpush3.bf16.msra.mxu1 %v400_v10 }
  0xe7   :  { %v129_v18 = vpop.f32.mrb[0].mxu0 }
  0xe8   :  { %v130_v19 = vadd.f32 %v129_v18, %v49_v16  ;;  %v131_v20 = vpop.f32.mrb[1].mxu0 }
  0xe9   :  { %v132_v21 = vadd.f32 %v131_v20, %v53_v17 }
  0xea   :  { %v140_v24 = vmax.f32 %v130_v19, 0.0 }
  0xeb   :  { %v135_v22 = vpop.f32.mrb[2].mxu0  ;;  %v141_v23 = vmax.f32 %v132_v21, 0.0 }
  0xec   :  { %v136_v25 = vadd.f32 %v135_v22, %v49_v16  ;;  %v137_v26 = vpop.f32.mrb[3].mxu0 }
  0xed   :  { %v138_v27 = vadd.f32 %v137_v26, %v53_v17  ;;  %247 = vmatprep.mubr.f32.mxu1 %v141_v23 }
  0xee   :  { %248 = vmatmul.mubr.f32.vlgmr.msra.gmra.mrb[0].mxu1 %v140_v24  ;;  %v142_v29 = vmax.f32 %v136_v25, 0.0 }
  0xef   :  { %v143_v28 = vmax.f32 %v138_v27, 0.0 }
  0xf1   :  { %252 = vmatprep.mubr.f32.mxu1 %v143_v28 }
  0xf2   :  { %253 = vmatmul.mubr.f32.gmra.mrb[2].mxu1 %v142_v29 }
 0x1c1   :  { %v348_v30 = vpop.f32.mrb[0].mxu1 }
 0x1c2   :  { %v349_v32 = vpop.f32.mrb[1].mxu1 }
 0x1c3   :  { %v350_v33 = vadd.f32 %v349_v32, %v348_v30 }
 0x1c5   :  { %v250_v34 = vadd.f32 %v350_v33, %v313_v31  ;;  %v351_v35 = vpop.f32.mrb[2].mxu1 }
 0x1c6   :  { %v352_v36 = vpop.f32.mrb[3].mxu1 }
 0x1c7   :  { %v353_v37 = vadd.f32 %v352_v36, %v351_v35  ;;  %v258_v38 = vadd.f32 %v250_v34, %v548_v48 }
 0x1c9   :  { %v255_v39 = vadd.f32 %v353_v37, %v313_v31  ;;  %v260_v40 = vsel %vm56_vm0, %v258_v38, 0.0 }
 0x1ca   :  { %261 = vadd.xlane.f32.xlu0 %v260_v40 }
 0x1cb   :  { %v259_v41 = vadd.f32 %v255_v39, %v568_v55 }
 0x1cd   :  { %v263_v42 = vsel %vm56_vm0, %v259_v41, 0.0 }
 0x1ce   :  { %264 = vadd.xlane.f32.xlu0 %v263_v42 }
 0x257   :  { %v262_v43 = vpop.xlane.xlu0 %261 }
 0x258   :  { %v267_v44 = vmul.f32 0.015625, %v262_v43 }
 0x25a   :  { %v269_v45 = vsub.f32 %v258_v38, %v267_v44 }
 0x25b   :  { %v265_v46 = vpop.xlane.xlu0 %264 }
 0x25c   :  { %v268_v47 = vmul.f32 0.015625, %v265_v46  ;;  %v271_v49 = vmul.f32 %v269_v45, %v269_v45 }
 0x25e   :  { %v270_v50 = vsub.f32 %v259_v41, %v268_v47  ;;  %v273_v51 = vsel %vm56_vm0, %v271_v49, 0.0 }
 0x25f   :  { %274 = vadd.xlane.f32.xlu1 %v273_v51 }
 0x260   :  { %v272_v48 = vmul.f32 %v270_v50, %v270_v50 }
 0x262   :  { %v276_v52 = vsel %vm56_vm0, %v272_v48, 0.0 }
 0x263   :  { %277 = vadd.xlane.f32.xlu1 %v276_v52 }
 0x2ec   :  { %v275_v53 = vpop.xlane.xlu1 %274 }
 0x2ed   :  { %v279_v54 = vmul.f32 0.015625, %v275_v53 }
 0x2ef   :  { %v281_v55 = vadd.f32 1e-05, %v279_v54 }
 0x2f0   :  { %v278_v56 = vpop.xlane.xlu1 %277 }
 0x2f1   :  { %403 = vrsqrt.f32 %v281_v55  ;;  %v280_v57 = vmul.f32 0.015625, %v278_v56 }
 0x2f3   :  { %v282_v58 = vadd.f32 1e-05, %v280_v57 }
 0x2f5   :  { %405 = vrsqrt.f32 %v282_v58 }
 0x2fb   :  { %v404_v59 = vpop.eup %403 }
 0x2fc   :  { %v285_v61 = vmul.f32 %v404_v59, %v269_v45 }
 0x2fe   :  { %v294_v63 = vmul.f32 %v314_v60, %v285_v61 }
 0x2ff   :  { %v406_v0 = vpop.eup %405 }
 0x300   :  { %v303_v1 = vadd.f32 %v315_v62, %v294_v63  ;;  %v286_v2 = vmul.f32 %v406_v0, %v270_v50 }
 0x302   :  { %305 = vst.msk [vmem:[%s641_s7] sm:$0xff] %vm56_vm0, %v303_v1  ;;  %v295_v3 = vmul.f32 %v314_v60, %v286_v2 }
 0x304   :  { %v304_v4 = vadd.f32 %v315_v62, %v295_v3 }
 0x306   :  { %306 = vst.msk [vmem:[%s641_s7 + $0x8] sm:$0xff] %vm56_vm0, %v304_v4 }

// kernel: closed_call.10
= control target key start
LH: loop header
LB: loop body
LE: loop exit
PB: predicated region body
PF: predicated region fallthrough
CT: control target
= control target key end

     0   :  { %s2644_s13 = smov 0   ;;  %s2970_s0 = inlined_call_operand.vmem [shape: f32[2,8,64], index: 0, kind: input, shape index: {}, may-alias: {0,1,2}]   ;;  %s2971_s1 = inlined_call_operand.vmem [shape: f32[2,8,64], index: 1, kind: input, shape index: {}, may-alias: {0,1,2}]   ;;  %s2972_s2 = inlined_call_operand.vmem [shape: f32[2,8,64], index: 2, kind: input, shape index: {}, may-alias: {0,1,2}]   ;;  %s2973_s3 = inlined_call_operand.vmem [shape: f32[64,64], index: 3, kind: input, shape index: {}]   ;;  %s2974_s4 = inlined_call_operand.vmem [shape: f32[64,64], index: 4, kind: input, shape index: {}]   ;;  %s2975_s5 = inlined_call_operand.vmem [shape: f32[64,64], index: 5, kind: input, shape index: {}]   ;;  %s2976_s6 = inlined_call_operand.vmem [shape: f32[64,64], index: 6, kind: input, shape index: {}]   ;;  %s2977_s7 = inlined_call_operand.vmem [shape: f32[1,64], index: 7, kind: input, shape index: {}]   ;;  %s2978_s8 = inlined_call_operand.vmem [shape: f32[1,64], index: 8, kind: input, shape index: {}]   ;;  %s2979_s9 = inlined_call_operand.vmem [shape: f32[1,64], index: 9, kind: input, shape index: {}]   ;;  %s2980_s10 = inlined_call_operand.vmem [shape: f32[2,8,64], index: 10, kind: output, shape index: {}]  }
   0x1 LB: > { %s2191_s14 = sadd.s32 4294967295, %s2570_s13   ;;  %p2195_p0 = scmp.ge.s32.totalorder %s2570_s13, 1  ;;  %s2570_s13 = sphi %s2644_s13, %s20_s13  }
   0x2   : > { %p329_p1 = scmp.lt.s32.totalorder %s2570_s13, 3 }
   0x4   : > { %p330_p2 = pnand %p2195_p0, %p329_p1 }
   0x5   : > { %v474_v0 = vld [vmem:[%s2974_s4] sm:$0xff] (!%p330_p2)  ;;  %v475_v1 = vld [vmem:[%s2974_s4 + $0x8] sm:$0xff] (!%p330_p2)  ;;  %v2572_v3 = vmov (!%p330_p2), 0.0|0.0   ;;  %v476_v6 = vld [vmem:[%s2974_s4 + $0x10] sm:$0xff] (!%p330_p2)  ;;  %p2674_p3 = scmp.lt.s32.totalorder (!%p330_p2), %s2191_s14, 1  ;;  %vm2573_vm0 = vmmov (!%p330_p2), 0  }
   0x6   : > { %333 = sbr.rel (%p330_p2) target bundleno = 3279 (0xccf), region = 60  ;;  %v392_v2 = vld [vmem:[%s2973_s3] sm:$0xff] (!%p330_p2)  ;;  %2469 = vmatprep.subr.bf16.mxu1 (!%p330_p2), %v2572_v3  ;;  %v2470_v4 = vpack.c.bf16 (!%p330_p2), %v475_v1, %v474_v0  ;;  %2457 = vmatprep.subr.bf16.mxu0 (!%p330_p2), %v2572_v3  ;;  %v393_v5 = vld [vmem:[%s2973_s3 + $0x8] sm:$0xff] (!%p330_p2)  ;;  %v477_v7 = vld [vmem:[%s2974_s4 + $0x18] sm:$0xff] (!%p330_p2)  ;;  %v2574_v11 = vmov (!%p330_p2), 0.0   ;;  %vm400_vm1 = vcmask (!%p330_p2), 523264  }
   0x7   : > { %v2458_v8 = vpack.c.bf16 (!%p330_p2), %v393_v5, %v392_v2  ;;  %v394_v9 = vld [vmem:[%s2973_s3 + $0x10] sm:$0xff] (!%p330_p2)  ;;  %v395_v10 = vld [vmem:[%s2973_s3 + $0x18] sm:$0xff] (!%p330_p2)  ;;  %2336 = vmatprep.mubr.msk.f32.mxu1 (!%p330_p2), %vm2573_vm0, %v2574_v11  ;;  %2317 = vmatprep.mubr.msk.f32.mxu0 (!%p330_p2), %vm2573_vm0, %v2574_v11  ;;  %v2473_v12 = vpack.c.bf16 (!%p330_p2), %v477_v7, %v476_v6  ;;  %v478_v14 = vld [vmem:[%s2974_s4 + $0x20] sm:$0xff] (!%p330_p2)  ;;  %vm636_vm2 = vcmask (!%p330_p2), 64512   ;;  %s2576_s21 = smov (!%p330_p2), 112   ;;  %s2578_s22 = smov (!%p330_p2), 96  }
   0x8   : > { %2471 = vmatpush3.bf16.msra.mxu1 (!%p330_p2), %v2470_v4  ;;  %v2461_v13 = vpack.c.bf16 (!%p330_p2), %v395_v10, %v394_v9  ;;  %v479_v15 = vld [vmem:[%s2974_s4 + $0x28] sm:$0xff] (!%p330_p2)  ;;  %v396_v16 = vld [vmem:[%s2973_s3 + $0x20] sm:$0xff] (!%p330_p2)  ;;  %v480_v20 = vld [vmem:[%s2974_s4 + $0x30] sm:$0xff] (!%p330_p2)  ;;  %s2579_s23 = smov (!%p330_p2), 88   ;;  %s2580_s24 = smov (!%p330_p2), 72   ;;  %vm1982_vm3 = vcmask (!%p330_p2), 130048  }
   0x9   : > { %2459 = vmatpush3.bf16.msra.mxu0 (!%p330_p2), %v2458_v8  ;;  %2472 = vmatprep.subr.bf16.mxu1 (!%p330_p2), %v2572_v3  ;;  %v397_v17 = vld [vmem:[%s2973_s3 + $0x28] sm:$0xff] (!%p330_p2)  ;;  %v2476_v18 = vpack.c.bf16 (!%p330_p2), %v479_v15, %v478_v14  ;;  %v481_v21 = vld [vmem:[%s2974_s4 + $0x38] sm:$0xff] (!%p330_p2)  ;;  %v398_v22 = vld [vmem:[%s2973_s3 + $0x30] sm:$0xff] (!%p330_p2)  ;;  %s2581_s25 = smov (!%p330_p2), 80   ;;  %s2582_s26 = smov (!%p330_p2), 8   ;;  %vm1984_vm4 = vcmask (!%p330_p2), 195584  }
   0xa   : > { %2460 = vmatprep.subr.bf16.mxu0 (!%p330_p2), %v2572_v3  ;;  %v2464_v19 = vpack.c.bf16 (!%p330_p2), %v397_v17, %v396_v16  ;;  %v399_v23 = vld [vmem:[%s2973_s3 + $0x38] sm:$0xff] (!%p330_p2)  ;;  %v2479_v24 = vpack.c.bf16 (!%p330_p2), %v481_v21, %v480_v20  ;;  %v555_v32 = vld [vmem:[%s2975_s5] sm:$0xff] (!%p330_p2)  ;;  %v556_v33 = vld [vmem:[%s2975_s5 + $0x8] sm:$0xff] (!%p330_p2)  ;;  %s2583_s28 = smov (!%p330_p2), 16   ;;  %s2586_s27 = smov (!%p330_p2), 40   ;;  %vm1986_vm5 = vcmask (!%p330_p2), 261120  }
   0xb   : > { %v2467_v25 = vpack.c.bf16 (!%p330_p2), %v399_v23, %v398_v22  ;;  %v557_v34 = vld [vmem:[%s2975_s5 + $0x10] sm:$0xff] (!%p330_p2)  ;;  %v2482_v35 = vpack.c.bf16 (!%p330_p2), %v556_v33, %v555_v32  ;;  %v558_v36 = vld [vmem:[%s2975_s5 + $0x18] sm:$0xff] (!%p330_p2)  ;;  %v559_v38 = vld [vmem:[%s2975_s5 + $0x20] sm:$0xff] (!%p330_p2)  ;;  %s2587_s29 = smov (!%p330_p2), 48   ;;  %s2588_s11 = smov (!%p330_p2), 56   ;;  %vm1988_vm6 = vcmask (!%p330_p2), 326656  }
   0xc   : > { %2474 = vmatpush3.bf16.msra.mxu1 (!%p330_p2), %v2473_v12  ;;  %v2485_v37 = vpack.c.bf16 (!%p330_p2), %v558_v36, %v557_v34  ;;  %v560_v39 = vld [vmem:[%s2975_s5 + $0x28] sm:$0xff] (!%p330_p2)  ;;  %v561_v41 = vld [vmem:[%s2975_s5 + $0x30] sm:$0xff] (!%p330_p2)  ;;  %v562_v42 = vld [vmem:[%s2975_s5 + $0x38] sm:$0xff] (!%p330_p2)  ;;  %vm1990_vm7 = vcmask (!%p330_p2), 392192   ;;  %vm1992_vm8 = vcmask (!%p330_p2), 457728  }
   0xd   : > { %s2983_s14 = smov (!%p2674_p3, %s2191_s14), 1  ;;  %2462 = vmatpush3.bf16.msra.mxu0 %v2461_v13  ;;  %2475 = vmatprep.subr.bf16.mxu1 %v2572_v3  ;;  %v2488_v40 = vpack.c.bf16 %v560_v39, %v559_v38  ;;  %v2491_v43 = vpack.c.bf16 %v562_v42, %v561_v41 }
   0xe   : > { %2463 = vmatprep.subr.bf16.mxu0 %v2572_v3  ;;  %s2720_s30 = sshll.u32 %s2983_s14, 3  ;;  %s2575_s14 = smov 120  }
   0xf   : > { %s380_s15 = scalar_lea.vmem %s2971_s1, %s2720_s30  ;;  %s376_s18 = scalar_lea.vmem %s2970_s0, %s2720_s30 }
  0x10   : > { %2477 = vmatpush3.bf16.msra.mxu1 %v2476_v18  ;;  %v390_v26 = vld [vmem:[%s380_s15] sm:$0xff]  ;;  %s384_s20 = scalar_lea.vmem %s2972_s2, %s2720_s30 }
  0x11   : > { %2465 = vmatpush3.bf16.msra.mxu0 %v2464_v19  ;;  %2478 = vmatprep.subr.bf16.mxu1 %v2572_v3  ;;  %v2732_v27 = vld [vmem:[%s376_s18] sm:$0xff] }
  0x12   : > { %2466 = vmatprep.subr.bf16.mxu0 %v2572_v3  ;;  %v391_v44 = vld [vmem:[%s384_s20] sm:$0xff] }
  0x14   : > { %2480 = vmatpush3.bf16.msra.mxu1 %v2479_v24 }
  0x15   : > { %2468 = vmatpush3.bf16.msra.mxu0 %v2467_v25  ;;  %2358 = vmatprep.subr.mxu1 %v2574_v11 }
  0x16   : > { %2481 = vmatprep.subr.bf16.mxu0 %v2572_v3 }
  0x17   : > { %2337 = vmatmul.mubr.msk.f32.vlgmr.msra.gmra.mrb[0].mxu1 %vm400_vm1, %v390_v26 }
  0x18   : > { %2318 = vmatmul.mubr.msk.f32.vlgmr.msra.gmra.mrb[0].mxu0 %vm400_vm1, %v2732_v27  ;;  %2360 = vmatprep.mubr.msk.f32.mxu1 %vm2573_vm0, %v2574_v11 }
  0x19   : > { %2355 = vmatprep.mubr.msk.f32.mxu0 %vm2573_vm0, %v2574_v11  ;;  %2483 = vmatpush3.bf16.msra.mxu0 %v2482_v35 }
  0x1a   : > { %2484 = vmatprep.subr.bf16.mxu0 %v2572_v3 }
  0x1d   : > { %2486 = vmatpush3.bf16.msra.mxu0 %v2485_v37 }
  0x1e   : > { %2487 = vmatprep.subr.bf16.mxu0 %v2572_v3 }
  0x21   : > { %2489 = vmatpush3.bf16.msra.mxu0 %v2488_v40 }
  0x22   : > { %2490 = vmatprep.subr.bf16.mxu0 %v2572_v3 }
  0x25   : > { %2492 = vmatpush3.bf16.msra.mxu0 %v2491_v43 }
  0x26   : > { %2398 = vmatprep.subr.mxu0 %v2574_v11 }
  0x28   : > { %2356 = vmatmul.mubr.msk.f32.vlgmr.msra.gmra.mrb[2].mxu0 %vm400_vm1, %v391_v44 }
  0x29   : > { %2400 = vmatprep.mubr.msk.f32.mxu0 %vm2573_vm0, %v2574_v11 }
  0xea   : > { %v2743_v28 = vpop.f32.mrb[0].mxu1 }
  0xeb   : > { %799 = vrot.lane.b32.xlu1 %v2743_v28, %s2575_s14  ;;  %v2338_v29 = vpop.f32.mrb[1].mxu1  ;;  %2359 = vmatpush3.xpose.msk.msra.mxu1 %vm636_vm2, %v2743_v28  ;;  %v2749_v30 = vpop.f32.mrb[0].mxu0 }
  0xec   : > { %v2319_v31 = vpop.f32.mrb[1].mxu0  ;;  %2363 = vmatprep.subr.mxu1 %v2574_v11 }
  0xee   : > { %2361 = vmatmul.mubr.msk.f32.vlgmr.msra.gmra.mrb[2].mxu1 %vm636_vm2, %v2749_v30 }
  0xef   : > { %797 = vrot.lane.b32.xlu1 %v2749_v30, %s2575_s14  ;;  %2365 = vmatprep.mubr.msk.f32.mxu1 %vm2573_vm0, %v2574_v11 }
  0xfb   : > { %v2795_v53 = vpop.f32.mrb[2].mxu0 }
  0xfc   : > { %v2357_v54 = vpop.f32.mrb[3].mxu0  ;;  %2364 = vmatpush3.msra.mxu1 %v2795_v53 }
  0xfd   : > { %2368 = vmatprep.subr.mxu1 %v2574_v11 }
 0x15d   : > { %v800_v57 = vpop.permute.xlu1 %799 }
 0x161   : > { %v798_v59 = vpop.permute.xlu1 %797 }
 0x1c1   : > { %v709_v45 = vpop.f32.mrb[2].mxu1 }
 0x1c2   : > { %v2362_v46 = vpop.f32.mrb[3].mxu1  ;;  %v713_v47 = vsel %vm636_vm2, %v709_v45, -inf }
 0x1c3   : > { %714 = vmax.xlane.f32.xlu0 %v713_v47 }
 0x250   : > { %v715_v48 = vpop.xlane.xlu0 %714 }
 0x251   : > { %v716_v49 = vsub.f32 %v709_v45, %v715_v48 }
 0x253   : > { %v717_v50 = vmul.f32 1.442695, %v716_v49 }
 0x255   : > { %2530 = vpow2.f32 %v717_v50 }
 0x25f   : > { %v2531_v51 = vpop.eup %2530 }
 0x260   : > { %v719_v52 = vsel %vm636_vm2, %v2531_v51, 0.0 }
 0x261   : > { %720 = vadd.xlane.f32.xlu0 %v719_v52 }
 0x2ee   : > { %v721_v55 = vpop.xlane.xlu0 %720 }
 0x2ef   : > { %2532 = vrcp.f32 %v721_v55 }
 0x2f9   : > { %v2533_v56 = vpop.eup %2532 }
 0x2fa   : > { %v723_v58 = vmul.f32 %v2533_v56, %v2531_v51 }
 0x2fc   : > { %2366 = vmatmul.mubr.msk.f32.vlgmr.msra.gmra.mrb[4].mxu1 %vm636_vm2, %v723_v58 }
 0x2fd   : > { %2369 = vmatpush3.xpose.msk.msra.mxu1 %vm636_vm2, %v800_v57  ;;  %2370 = vmatprep.mubr.msk.f32.mxu1 %vm2573_vm0, %v2574_v11 }
 0x2fe   : > { %2373 = vmatprep.subr.mxu1 %v2574_v11 }
 0x300   : > { %2371 = vmatmul.mubr.msk.f32.vlgmr.msra.gmra.mrb[6].mxu1 %vm636_vm2, %v798_v59 }
 0x301   : > { %2375 = vmatprep.mubr.msk.f32.mxu1 %vm2573_vm0, %v2574_v11 }
 0x3cf   : > { %v2807_v60 = vpop.f32.mrb[4].mxu1 }
 0x3d0   : > { %v2367_v61 = vpop.f32.mrb[5].mxu1 }
 0x3d3   : > { %v871_v62 = vpop.f32.mrb[6].mxu1 }
 0x3d4   : > { %v2372_v63 = vpop.f32.mrb[7].mxu1  ;;  %v875_v0 = vsel %vm636_vm2, %v871_v62, -inf }
 0x3d5   : > { %876 = vmax.xlane.f32.xlu0 %v875_v0 }
 0x3eb   : > { %887 = vrot.lane.b32.xlu0 %v2795_v53, %s2575_s14  ;;  %s2577_s14 = smov 104  }
 0x3ef   : > { %965 = vrot.lane.b32.xlu0 %v2743_v28, %s2576_s21 }
 0x3f3   : > { %963 = vrot.lane.b32.xlu0 %v2749_v30, %s2576_s21 }
 0x462   : > { %v877_v1 = vpop.xlane.xlu0 %876 }
 0x463   : > { %v878_v2 = vsub.f32 %v871_v62, %v877_v1 }
 0x465   : > { %v879_v4 = vmul.f32 1.442695, %v878_v2 }
 0x466   : > { %v888_v5 = vpop.permute.xlu0 %887 }
 0x467   : > { %2534 = vpow2.f32 %v879_v4  ;;  %2374 = vmatpush3.msra.mxu1 %v888_v5 }
 0x468   : > { %2378 = vmatprep.subr.mxu1 %v2574_v11 }
 0x46a   : > { %v966_v10 = vpop.permute.xlu0 %965 }
 0x46e   : > { %v964_v13 = vpop.permute.xlu0 %963 }
 0x471   : > { %v2535_v6 = vpop.eup %2534 }
 0x472   : > { %v881_v7 = vsel %vm636_vm2, %v2535_v6, 0.0 }
 0x473   : > { %882 = vadd.xlane.f32.xlu1 %v881_v7 }
 0x484   : > { %1052 = vrot.lane.b32.xlu1 %v2795_v53, %s2576_s21 }
 0x488   : > { %1130 = vrot.lane.b32.xlu1 %v2743_v28, %s2577_s14 }
 0x48c   : > { %1128 = vrot.lane.b32.xlu1 %v2749_v30, %s2577_s14 }
 0x490   : > { %1293 = vrot.lane.b32.xlu1 %v2749_v30, %s2578_s22 }
 0x494   : > { %1460 = vrot.lane.b32.xlu1 %v2743_v28, %s2579_s23 }
 0x498   : > { %1458 = vrot.lane.b32.xlu1 %v2749_v30, %s2579_s23 }
 0x500   : > { %v883_v8 = vpop.xlane.xlu1 %882 }
 0x501   : > { %2536 = vrcp.f32 %v883_v8 }
 0x504   : > { %v1053_v14 = vpop.permute.xlu1 %1052 }
 0x508   : > { %v1131_v20 = vpop.permute.xlu1 %1130 }
 0x50b   : > { %v2537_v9 = vpop.eup %2536 }
 0x50c   : > { %v885_v12 = vmul.f32 %v2537_v9, %v2535_v6  ;;  %v1129_v21 = vpop.permute.xlu1 %1128 }
 0x50e   : > { %2376 = vmatmul.mubr.msk.f32.vlgmr.msra.gmra.mrb[8].mxu1 %vm636_vm2, %v885_v12 }
 0x50f   : > { %2379 = vmatpush3.xpose.msk.msra.mxu1 %vm636_vm2, %v966_v10  ;;  %2380 = vmatprep.mubr.msk.f32.mxu1 %vm2573_vm0, %v2574_v11 }
 0x510   : > { %2383 = vmatprep.subr.mxu1 %v2574_v11  ;;  %v1294_v22 = vpop.permute.xlu1 %1293 }
 0x512   : > { %2381 = vmatmul.mubr.msk.f32.vlgmr.msra.gmra.mrb[10].mxu1 %vm636_vm2, %v964_v13 }
 0x513   : > { %2384 = vmatpush3.msra.mxu1 %v1053_v14  ;;  %2385 = vmatprep.mubr.msk.f32.mxu1 %vm2573_vm0, %v2574_v11 }
 0x514   : > { %2388 = vmatprep.subr.mxu1 %v2574_v11  ;;  %v1461_v29 = vpop.permute.xlu1 %1460 }
 0x518   : > { %v1459_v31 = vpop.permute.xlu1 %1458 }
 0x5e1   : > { %v2836_v15 = vpop.f32.mrb[8].mxu1 }
 0x5e2   : > { %v2377_v16 = vpop.f32.mrb[9].mxu1 }
 0x5e5   : > { %v1037_v17 = vpop.f32.mrb[10].mxu1 }
 0x5e6   : > { %v2382_v18 = vpop.f32.mrb[11].mxu1  ;;  %v1041_v19 = vsel %vm636_vm2, %v1037_v17, -inf }
 0x5e7   : > { %1042 = vmax.xlane.f32.xlu0 %v1041_v19 }
 0x5fd   : > { %1295 = vrot.lane.b32.xlu0 %v2743_v28, %s2578_s22 }
 0x601   : > { %1788 = vrot.lane.b32.xlu0 %v2749_v30, %s2580_s24 }
 0x674   : > { %v1043_v23 = vpop.xlane.xlu0 %1042 }
 0x675   : > { %v1044_v24 = vsub.f32 %v1037_v17, %v1043_v23 }
 0x677   : > { %v1045_v25 = vmul.f32 1.442695, %v1044_v24 }
 0x678   : > { %v1296_v26 = vpop.permute.xlu0 %1295 }
 0x679   : > { %2538 = vpow2.f32 %v1045_v25  ;;  %2399 = vmatpush3.xpose.msk.msra.mxu0 %vm636_vm2, %v1296_v26 }
 0x67a   : > { %2408 = vmatprep.subr.mxu0 %v2574_v11 }
 0x67c   : > { %2401 = vmatmul.mubr.msk.f32.vlgmr.msra.gmra.mrb[4].mxu0 %vm636_vm2, %v1294_v22 }
 0x67d   : > { %2409 = vmatpush3.xpose.msk.msra.mxu0 %vm636_vm2, %v1461_v29  ;;  %2410 = vmatprep.mubr.msk.f32.mxu0 %vm2573_vm0, %v2574_v11 }
 0x67e   : > { %2418 = vmatprep.subr.mxu0 %v2574_v11 }
 0x680   : > { %2411 = vmatmul.mubr.msk.f32.vlgmr.msra.gmra.mrb[6].mxu0 %vm636_vm2, %v1459_v31 }
 0x681   : > { %2420 = vmatprep.mubr.msk.f32.mxu0 %vm2573_vm0, %v2574_v11 }
 0x683   : > { %v2539_v32 = vpop.eup %2538 }
 0x684   : > { %v1047_v33 = vsel %vm636_vm2, %v2539_v32, 0.0 }
 0x685   : > { %1048 = vadd.xlane.f32.xlu1 %v1047_v33 }
 0x696   : > { %1625 = vrot.lane.b32.xlu1 %v2743_v28, %s2581_s25 }
 0x69a   : > { %1623 = vrot.lane.b32.xlu1 %v2749_v30, %s2581_s25 }
 0x69e   : > { %1790 = vrot.lane.b32.xlu1 %v2743_v28, %s2580_s24  ;;  %v1789_v28 = vpop.permute.xlu0 %1788 }
 0x712   : > { %v1049_v34 = vpop.xlane.xlu1 %1048 }
 0x713   : > { %2540 = vrcp.f32 %v1049_v34 }
 0x716   : > { %v1626_v35 = vpop.permute.xlu1 %1625 }
 0x717   : > { %2419 = vmatpush3.xpose.msk.msra.mxu0 %vm636_vm2, %v1626_v35 }
 0x718   : > { %2428 = vmatprep.subr.mxu0 %v2574_v11 }
 0x71a   : > { %v1624_v36 = vpop.permute.xlu1 %1623 }
 0x71b   : > { %2421 = vmatmul.mubr.msk.f32.vlgmr.msra.gmra.mrb[8].mxu0 %vm636_vm2, %v1624_v36 }
 0x71c   : > { %2430 = vmatprep.mubr.msk.f32.mxu0 %vm2573_vm0, %v2574_v11 }
 0x71d   : > { %v2541_v37 = vpop.eup %2540 }
 0x71e   : > { %v1051_v38 = vmul.f32 %v2541_v37, %v2539_v32  ;;  %v1791_v39 = vpop.permute.xlu1 %1790 }
 0x71f   : > { %2429 = vmatpush3.xpose.msk.msra.mxu0 %vm636_vm2, %v1791_v39 }
 0x720   : > { %2386 = vmatmul.mubr.msk.f32.vlgmr.msra.gmra.mrb[12].mxu1 %vm636_vm2, %v1051_v38  ;;  %2493 = vmatprep.subr.bf16.mxu0 %v2572_v3 }
 0x721   : > { %2389 = vmatpush3.xpose.msk.msra.mxu1 %vm636_vm2, %v1131_v20  ;;  %2390 = vmatprep.mubr.msk.f32.mxu1 %vm2573_vm0, %v2574_v11 }
 0x722   : > { %2431 = vmatmul.mubr.msk.f32.vlgmr.msra.gmra.mrb[10].mxu0 %vm636_vm2, %v1789_v28  ;;  %2393 = vmatprep.subr.mxu1 %v2574_v11 }
 0x723   : > { %2454 = vmatprep.mubr.msk.f32.mxu0 %vm2573_vm0, %v2574_v11 }
 0x724   : > { %2391 = vmatmul.mubr.msk.f32.vlgmr.msra.gmra.mrb[14].mxu1 %vm636_vm2, %v1129_v21 }
 0x725   : > { %2395 = vmatprep.mubr.msk.f32.mxu1 %vm2573_vm0, %v2574_v11 }
 0x74f   : > { %v1367_v30 = vpop.f32.mrb[4].mxu0 }
 0x750   : > { %v2402_v40 = vpop.f32.mrb[5].mxu0  ;;  %v1371_v41 = vsel %vm636_vm2, %v1367_v30, -inf }
 0x751   : > { %1372 = vmax.xlane.f32.xlu0 %v1371_v41  ;;  %v1994_v41 = vld [vmem:[%s2976_s6] sm:$0xff] }
 0x753   : > { %v1532_v42 = vpop.f32.mrb[6].mxu0 }
 0x754   : > { %v2412_v43 = vpop.f32.mrb[7].mxu0  ;;  %v1536_v44 = vsel %vm636_vm2, %v1532_v42, -inf }
 0x755   : > { %1537 = vmax.xlane.f32.xlu0 %v1536_v44  ;;  %v1996_v44 = vld [vmem:[%s2976_s6 + $0x10] sm:$0xff] }
 0x7de   : > { %v1373_v45 = vpop.xlane.xlu0 %1372 }
 0x7df   : > { %v1374_v46 = vsub.f32 %v1367_v30, %v1373_v45 }
 0x7e1   : > { %v1375_v48 = vmul.f32 1.442695, %v1374_v46  ;;  %v1998_v46 = vld [vmem:[%s2976_s6 + $0x20] sm:$0xff] }
 0x7e2   : > { %v1538_v47 = vpop.xlane.xlu0 %1537 }
 0x7e3   : > { %v1539_v49 = vsub.f32 %v1532_v42, %v1538_v47  ;;  %2542 = vpow2.f32 %v1375_v48  ;;  %v1995_v42 = vld [vmem:[%s2976_s6 + $0x8] sm:$0xff] }
 0x7e4   : > { %v2494_v43 = vpack.c.bf16 %v1995_v42, %v1994_v41  ;;  %v1999_v47 = vld [vmem:[%s2976_s6 + $0x28] sm:$0xff] }
 0x7e5   : > { %v1540_v51 = vmul.f32 1.442695, %v1539_v49  ;;  %v2500_v48 = vpack.c.bf16 %v1999_v47, %v1998_v46 }
 0x7e6   : > { %2495 = vmatpush3.bf16.msra.mxu0 %v2494_v43 }
 0x7e7   : > { %2544 = vpow2.f32 %v1540_v51  ;;  %2496 = vmatprep.subr.bf16.mxu0 %v2572_v3  ;;  %v2001_v51 = vld [vmem:[%s2976_s6 + $0x38] sm:$0xff] }
 0x7ed   : > { %v2881_v59 = vpop.eup %2542 }
 0x7ee   : > { %v1697_v50 = vpop.f32.mrb[8].mxu0  ;;  %v1377_v0 = vsel %vm636_vm2, %v2881_v59, 0.0 }
 0x7ef   : > { %v2422_v52 = vpop.f32.mrb[9].mxu0  ;;  %v1701_v1 = vsel %vm636_vm2, %v1697_v50, -inf }
 0x7f1   : > { %v2545_v2 = vpop.eup %2544 }
 0x7f2   : > { %v1542_v4 = vsel %vm636_vm2, %v2545_v2, 0.0 }
 0x7f3   : > { %v1124_v54 = vpop.f32.mrb[12].mxu1 }
 0x7f4   : > { %v2387_v55 = vpop.f32.mrb[13].mxu1 }
 0x7f5   : > { %v1862_v56 = vpop.f32.mrb[10].mxu0 }
 0x7f6   : > { %v2432_v57 = vpop.f32.mrb[11].mxu0  ;;  %v1866_v58 = vsel %vm636_vm2, %v1862_v56, -inf }
 0x7f7   : > { %v1202_v61 = vpop.f32.mrb[14].mxu1  ;;  %1867 = vmax.xlane.f32.xlu0 %v1866_v58 }
 0x7f8   : > { %v2392_v62 = vpop.f32.mrb[15].mxu1  ;;  %v1206_v63 = vsel %vm636_vm2, %v1202_v61, -inf }
 0x7f9   : > { %1207 = vmax.xlane.f32.xlu1 %v1206_v63 }
 0x7fb   : > { %1378 = vadd.xlane.f32.xlu0 %v1377_v0 }
 0x7fd   : > { %1702 = vmax.xlane.f32.xlu1 %v1701_v1 }
 0x801   : > { %1543 = vadd.xlane.f32.xlu1 %v1542_v4 }
 0x884   : > { %v1868_v5 = vpop.xlane.xlu0 %1867 }
 0x885   : > { %v1869_v6 = vsub.f32 %v1862_v56, %v1868_v5 }
 0x886   : > { %v1208_v7 = vpop.xlane.xlu1 %1207 }
 0x887   : > { %v1870_v8 = vmul.f32 1.442695, %v1869_v6  ;;  %v1209_v18 = vsub.f32 %v1202_v61, %v1208_v7 }
 0x888   : > { %v1379_v22 = vpop.xlane.xlu0 %1378 }
 0x889   : > { %2546 = vpow2.f32 %v1870_v8  ;;  %v1210_v19 = vmul.f32 1.442695, %v1209_v18 }
 0x88a   : > { %v1703_v9 = vpop.xlane.xlu1 %1702 }
 0x88b   : > { %v1704_v10 = vsub.f32 %v1697_v50, %v1703_v9  ;;  %v2000_v50 = vld [vmem:[%s2976_s6 + $0x30] sm:$0xff] }
 0x88d   : > { %v1705_v12 = vmul.f32 1.442695, %v1704_v10 }
 0x88f   : > { %2548 = vpow2.f32 %v1705_v12 }
 0x890   : > { %2550 = vpow2.f32 %v1210_v19 }
 0x893   : > { %v2547_v13 = vpop.eup %2546 }
 0x894   : > { %v1872_v14 = vsel %vm636_vm2, %v2547_v13, 0.0 }
 0x895   : > { %1873 = vadd.xlane.f32.xlu1 %v1872_v14 }
 0x899   : > { %v2549_v16 = vpop.eup %2548 }
 0x89a   : > { %v1707_v17 = vsel %vm636_vm2, %v2549_v16, 0.0  ;;  %v2551_v20 = vpop.eup %2550 }
 0x89b   : > { %1708 = vadd.xlane.f32.xlu0 %v1707_v17  ;;  %v1212_v21 = vsel %vm636_vm2, %v2551_v20, 0.0 }
 0x8a6   : > { %1382 = vrot.lane.b32.xlu1 %v2795_v53, %s2578_s22 }
 0x8b1   : > { %1217 = vrot.lane.b32.xlu0 %v2795_v53, %s2577_s14  ;;  %s388_s14 = scalar_lea.vmem %s2980_s10, %s2720_s30 }
 0x8b5   : > { %1712 = vrot.lane.b32.xlu0 %v2795_v53, %s2581_s25 }
 0x8b9   : > { %1954 = vrot.lane.b32.xlu0 %v2836_v15, %s2582_s26  ;;  %v1544_v15 = vpop.xlane.xlu1 %1543  ;;  %s2584_s26 = smov 24  }
 0x8ca   : > { %1213 = vadd.xlane.f32.xlu1 %v1212_v21 }
 0x8db   : > { %1547 = vrot.lane.b32.xlu1 %v2795_v53, %s2579_s23 }
 0x8df   : > { %1877 = vrot.lane.b32.xlu1 %v2795_v53, %s2580_s24 }
 0x8e3   : > { %1958 = vrot.lane.b32.xlu1 %v1124_v54, %s2583_s28  ;;  %v2503_v54 = vpack.c.bf16 %v2001_v51, %v2000_v50  ;;  %s2585_s28 = smov 32  }
 0x922   : > { %v1874_v25 = vpop.xlane.xlu1 %1873 }
 0x926   : > { %v1383_v26 = vpop.permute.xlu1 %1382 }
 0x928   : > { %v1709_v23 = vpop.xlane.xlu0 %1708 }
 0x92c   : > { %v1218_v24 = vpop.permute.xlu0 %1217 }
 0x92d   : > { %2394 = vmatpush3.msra.mxu1 %v1218_v24 }
 0x92e   : > { %2403 = vmatprep.subr.mxu1 %v2574_v11 }
 0x930   : > { %v1713_v38 = vpop.permute.xlu0 %1712 }
 0x934   : > { %v1955_v63 = vpop.permute.xlu0 %1954 }
 0x935   : > { %v1981_v4 = vsel %vm636_vm2, %v2807_v60, %v1955_v63 }
 0x957   : > { %v1214_v29 = vpop.xlane.xlu1 %1213 }
 0x958   : > { %2552 = vrcp.f32 %v1214_v29 }
 0x959   : > { %2554 = vrcp.f32 %v1379_v22 }
 0x95a   : > { %2556 = vrcp.f32 %v1544_v15 }
 0x95b   : > { %2558 = vrcp.f32 %v1709_v23  ;;  %v1548_v35 = vpop.permute.xlu1 %1547 }
 0x95c   : > { %2560 = vrcp.f32 %v1874_v25 }
 0x95f   : > { %v1878_v30 = vpop.permute.xlu1 %1877 }
 0x962   : > { %v2553_v31 = vpop.eup %2552 }
 0x963   : > { %v1216_v32 = vmul.f32 %v2553_v31, %v2551_v20  ;;  %v2555_v33 = vpop.eup %2554  ;;  %v1959_v0 = vpop.permute.xlu1 %1958 }
 0x964   : > { %v1381_v53 = vmul.f32 %v2555_v33, %v2881_v59  ;;  %v2557_v34 = vpop.eup %2556  ;;  %v1983_v5 = vsel %vm1982_vm3, %v1981_v4, %v1959_v0  ;;  %v2230_v33 = vld [vmem:[%s2979_s9] ss:$0 sm:$0xff] }
 0x965   : > { %2396 = vmatmul.mubr.msk.f32.vlgmr.msra.gmra.mrb[16].mxu1 %vm636_vm2, %v1216_v32  ;;  %v1546_v36 = vmul.f32 %v2557_v34, %v2545_v2  ;;  %v2559_v37 = vpop.eup %2558 }
 0x966   : > { %2404 = vmatpush3.msra.mxu1 %v1383_v26  ;;  %2405 = vmatprep.mubr.msk.f32.mxu1 %vm2573_vm0, %v2574_v11  ;;  %v1711_v39 = vmul.f32 %v2559_v37, %v2549_v16  ;;  %v2561_v28 = vpop.eup %2560  ;;  %v2227_v16 = vld [vmem:[%s2977_s7] ss:$0 sm:$0xff] }
 0x967   : > { %2413 = vmatprep.subr.mxu1 %v2574_v11  ;;  %v1876_v40 = vmul.f32 %v2561_v28, %v2547_v13 }
 0x969   : > { %2406 = vmatmul.mubr.msk.f32.vlgmr.msra.gmra.mrb[18].mxu1 %vm636_vm2, %v1381_v53 }
 0x96a   : > { %2414 = vmatpush3.msra.mxu1 %v1548_v35  ;;  %2415 = vmatprep.mubr.msk.f32.mxu1 %vm2573_vm0, %v2574_v11 }
 0x96b   : > { %2423 = vmatprep.subr.mxu1 %v2574_v11 }
 0x96d   : > { %2416 = vmatmul.mubr.msk.f32.vlgmr.msra.gmra.mrb[20].mxu1 %vm636_vm2, %v1546_v36 }
 0x96e   : > { %2424 = vmatpush3.msra.mxu1 %v1713_v38  ;;  %2425 = vmatprep.mubr.msk.f32.mxu1 %vm2573_vm0, %v2574_v11 }
 0x96f   : > { %2433 = vmatprep.subr.mxu1 %v2574_v11 }
 0x971   : > { %2426 = vmatmul.mubr.msk.f32.vlgmr.msra.gmra.mrb[22].mxu1 %vm636_vm2, %v1711_v39 }
 0x972   : > { %2434 = vmatpush3.msra.mxu1 %v1878_v30  ;;  %2435 = vmatprep.mubr.msk.f32.mxu1 %vm2573_vm0, %v2574_v11  ;;  %v1997_v11 = vld [vmem:[%s2976_s6 + $0x18] sm:$0xff] }
 0x973   : > { %v2497_v45 = vpack.c.bf16 %v1997_v11, %v1996_v44 }
 0x975   : > { %2436 = vmatmul.mubr.msk.f32.vlgmr.msra.gmra.mrb[24].mxu1 %vm636_vm2, %v1876_v40  ;;  %2498 = vmatpush3.bf16.msra.mxu0 %v2497_v45 }
 0x976   : > { %2499 = vmatprep.subr.bf16.mxu0 %v2572_v3 }
 0x979   : > { %2501 = vmatpush3.bf16.msra.mxu0 %v2500_v48 }
 0x97a   : > { %2502 = vmatprep.subr.bf16.mxu0 %v2572_v3 }
 0x97d   : > { %2504 = vmatpush3.bf16.msra.mxu0 %v2503_v54 }
 0xa38   : > { %v1289_v49 = vpop.f32.mrb[16].mxu1 }
 0xa39   : > { %1962 = vrot.lane.b32.xlu0 %v1289_v49, %s2584_s26  ;;  %v2397_v52 = vpop.f32.mrb[17].mxu1 }
 0xa3c   : > { %v1454_v55 = vpop.f32.mrb[18].mxu1 }
 0xa3d   : > { %1966 = vrot.lane.b32.xlu1 %v1454_v55, %s2585_s28  ;;  %v2407_v56 = vpop.f32.mrb[19].mxu1 }
 0xa40   : > { %v1619_v57 = vpop.f32.mrb[20].mxu1 }
 0xa41   : > { %1970 = vrot.lane.b32.xlu0 %v1619_v57, %s2586_s27  ;;  %v2417_v3 = vpop.f32.mrb[21].mxu1 }
 0xa44   : > { %v1784_v58 = vpop.f32.mrb[22].mxu1 }
 0xa45   : > { %1974 = vrot.lane.b32.xlu1 %v1784_v58, %s2587_s29  ;;  %v2427_v59 = vpop.f32.mrb[23].mxu1 }
 0xa48   : > { %v1949_v61 = vpop.f32.mrb[24].mxu1 }
 0xa49   : > { %1978 = vrot.lane.b32.xlu0 %v1949_v61, %s2588_s11  ;;  %v2437_v62 = vpop.f32.mrb[25].mxu1 }
 0xaab   : > { %v1963_v1 = vpop.permute.xlu0 %1962 }
 0xaac   : > { %v1985_v7 = vsel %vm1984_vm4, %v1983_v5, %v1963_v1 }
 0xaaf   : > { %v1967_v2 = vpop.permute.xlu1 %1966 }
 0xab0   : > { %v1987_v9 = vsel %vm1986_vm5, %v1985_v7, %v1967_v2 }
 0xab3   : > { %v1971_v6 = vpop.permute.xlu0 %1970 }
 0xab4   : > { %v1989_v10 = vsel %vm1988_vm6, %v1987_v9, %v1971_v6 }
 0xab7   : > { %v1975_v8 = vpop.permute.xlu1 %1974 }
 0xab8   : > { %v1991_v12 = vsel %vm1990_vm7, %v1989_v10, %v1975_v8 }
 0xabb   : > { %v1979_v13 = vpop.permute.xlu0 %1978 }
 0xabc   : > { %v1993_v14 = vsel %vm1992_vm8, %v1991_v12, %v1979_v13 }
 0xabd   : > { %2455 = vmatmul.mubr.msk.f32.vlgmr.msra.gmra.mrb[12].mxu0 %vm400_vm1, %v1993_v14 }
 0xb90   : > { %v2078_v60 = vpop.f32.mrb[12].mxu0 }
 0xb91   : > { %v2079_v17 = vadd.f32 %v2227_v16, %v2078_v60  ;;  %v2456_v18 = vpop.f32.mrb[13].mxu0 }
 0xb93   : > { %v2082_v19 = vadd.f32 %v2079_v17, %v2732_v27  ;;  %v2229_v27 = vld [vmem:[%s2978_s8] ss:$0 sm:$0xff] }
 0xb95   : > { %v2083_v20 = vsel %vm400_vm1, %v2082_v19, 0.0 }
 0xb96   : > { %2084 = vadd.xlane.f32.xlu1 %v2083_v20 }
 0xc23   : > { %v2085_v21 = vpop.xlane.xlu1 %2084 }
 0xc24   : > { %v2087_v22 = vmul.f32 0.015625, %v2085_v21 }
 0xc26   : > { %v2088_v23 = vsub.f32 %v2082_v19, %v2087_v22 }
 0xc28   : > { %v2089_v24 = vmul.f32 %v2088_v23, %v2088_v23 }
 0xc2a   : > { %v2090_v15 = vsel %vm400_vm1, %v2089_v24, 0.0 }
 0xc2b   : > { %2091 = vadd.xlane.f32.xlu0 %v2090_v15 }
 0xcb8   : > { %v2092_v25 = vpop.xlane.xlu0 %2091 }
 0xcb9   : > { %v2093_v26 = vmul.f32 0.015625, %v2092_v25 }
 0xcbb   : > { %v2094_v29 = vadd.f32 1e-05, %v2093_v26 }
 0xcbd   : > { %2562 = vrsqrt.f32 %v2094_v29 }
 0xcc7   : > { %v2563_v31 = vpop.eup %2562 }
 0xcc8   : > { %v2096_v32 = vmul.f32 %v2563_v31, %v2088_v23 }
 0xcca   : > { %v2104_v53 = vmul.f32 %v2229_v27, %v2096_v32 }
 0xccc   : > { %v2112_v34 = vadd.f32 %v2230_v33, %v2104_v53 }
 0xcce   : > { %2113 = vst.msk [vmem:[%s388_s14] sm:$0xff] %vm400_vm1, %v2112_v34 }
 0xccf PF: > { %s20_s13 = sadd.s32 1, %s2570_s13  }
 0xcd0   : > { %p17_p4 = scmp.ge.s32.totalorder %s20_s13, 4  }
 0xcd2   :  { %19 = sbr.rel (!%p17_p4) target bundleno = 1 (0x1), region = 96 }

</bundles_post_ra>
